<compile_context>
chip_gen: v6e
topology: v6e:2x2x1
jax: 0.10.0
libtpu: 0.0.40
codegen_flags: <defaults>
</compile_context>

<pallas_src>
import jax
import jax.numpy as jnp
from jax.experimental import pallas as pl
from jax.experimental.pallas import tpu as pltpu

# Small demo sizes consistent with the module's forward pass.
INPUT_SIZE = 9
HIDDEN_SIZE = 32
NUM_CLASSES = 9
NUM_LAYERS = 3

BATCH = 2
SEQ = 8


def fused_lstm_fc_kernel(
    x_ref,                                   # (T*B, I)  time-major rows (t*B + b)
    wih0_ref, whh0_ref, b0_ref,              # layer 0 params
    wih1_ref, whh1_ref, b1_ref,              # layer 1 params
    wih2_ref, whh2_ref, b2_ref,              # layer 2 params
    wfc_ref, bfc_ref,                        # fc params
    out_ref,                                 # (B, C) logits
):
    H = whh0_ref.shape[0]
    B = out_ref.shape[0]
    T = x_ref.shape[0] // B

    # Lane mask selecting the g-gate (tanh) lanes inside the [i|f|g|o]-packed 4H gates.
    lane = jax.lax.broadcasted_iota(jnp.int32, (B, 4 * H), 1)
    tanh_lanes = jnp.logical_and(lane >= 2 * H, lane < 3 * H)

    def run_layer(x_tm, wih_ref, whh_ref, b_ref, return_seq=True):
        """x_tm: (T*B, D) time-major layer input (row index = t*B + b)."""
        # Hoisted, non-recurrent input projection: one well-shaped matmul.
        gx = jnp.dot(x_tm, wih_ref[...], preferred_element_type=jnp.float32)  # (T*B, 4H)
        whh = whh_ref[...]                      # (H, 4H), loaded once
        bias = b_ref[...]                       # (1, 4H), fused b_ih + b_hh

        h = jnp.zeros((B, H), dtype=jnp.float32)
        c = jnp.zeros((B, H), dtype=jnp.float32)
        hs = []
        for t in range(T):                      # static T -> fully unrolled recurrence
            gates = (
                gx[t * B:(t + 1) * B, :]
                + jnp.dot(h, whh, preferred_element_type=jnp.float32)
                + bias
            )                                   # (B, 4H), PyTorch order [i, f, g, o]
            # One full-width sigmoid + one full-width tanh + one select.
            act = jnp.where(tanh_lanes, jnp.tanh(gates), jax.nn.sigmoid(gates))
            i_g = act[:, 0 * H:1 * H]
            f_g = act[:, 1 * H:2 * H]
            g_g = act[:, 2 * H:3 * H]
            o_g = act[:, 3 * H:4 * H]
            c = f_g * c + i_g * g_g
            h = o_g * jnp.tanh(c)
            hs.append(h)
        h_seq = jnp.concatenate(hs, axis=0) if return_seq else None   # (T*B, H)
        return h_seq, h

    x_tm = x_ref[...].astype(jnp.float32)
    h_tm, _ = run_layer(x_tm, wih0_ref, whh0_ref, b0_ref, return_seq=True)
    h_tm, _ = run_layer(h_tm, wih1_ref, whh1_ref, b1_ref, return_seq=True)
    _, h_last = run_layer(h_tm, wih2_ref, whh2_ref, b2_ref, return_seq=False)

    # Final fc on the last timestep's hidden state (out[:, -1, :] @ W_fc^T + b_fc).
    out_ref[...] = (
        jnp.dot(h_last, wfc_ref[...], preferred_element_type=jnp.float32)
        + bfc_ref[...]
    ).astype(out_ref.dtype)


def rnn_forward(x, params):
    """x: (B, T, input_size) float32 -> logits (B, num_classes)."""
    B, T, I = x.shape
    # Time-major flattened view (row = t*B + b); tiny XLA op, lets the fused
    # kernel use only static contiguous sublane slices.
    x_tm = jnp.transpose(x, (1, 0, 2)).reshape(T * B, I)

    (w0, u0, b0), (w1, u1, b1), (w2, u2, b2) = params["lstm"]
    wfc, bfc = params["fc"]
    C = wfc.shape[1]

    vmem = pl.BlockSpec(memory_space=pltpu.MemorySpace.VMEM)
    return pl.pallas_call(
        fused_lstm_fc_kernel,
        out_shape=jax.ShapeDtypeStruct((B, C), jnp.float32),
        in_specs=[vmem] * 12,
        out_specs=vmem,
    )(x_tm, w0, u0, b0, w1, u1, b1, w2, u2, b2, wfc, bfc)


def init_params(key):
    """PyTorch-shaped params (uniform +-1/sqrt(H)), pre-transposed for x @ W^T."""
    H = HIDDEN_SIZE
    bound = 1.0 / jnp.sqrt(jnp.float32(H))
    params = {"lstm": [], "fc": None}
    for layer in range(NUM_LAYERS):
        in_dim = INPUT_SIZE if layer == 0 else H
        key, k1, k2, k3, k4 = jax.random.split(key, 5)
        w_ih = jax.random.uniform(k1, (4 * H, in_dim), jnp.float32, -bound, bound)
        w_hh = jax.random.uniform(k2, (4 * H, H), jnp.float32, -bound, bound)
        b_ih = jax.random.uniform(k3, (4 * H,), jnp.float32, -bound, bound)
        b_hh = jax.random.uniform(k4, (4 * H,), jnp.float32, -bound, bound)
        params["lstm"].append(
            (w_ih.T, w_hh.T, (b_ih + b_hh).reshape(1, 4 * H))
        )
    key, k1, k2 = jax.random.split(key, 3)
    w_fc = jax.random.uniform(k1, (NUM_CLASSES, H), jnp.float32, -bound, bound)
    b_fc = jax.random.uniform(k2, (NUM_CLASSES,), jnp.float32, -bound, bound)
    params["fc"] = (w_fc.T, b_fc.reshape(1, NUM_CLASSES))
    return params


def rnn_forward_ref(x, params):
    """Pure-JAX reference with identical semantics (for a correctness check)."""
    B, T, _ = x.shape
    h_seq = x
    for (wih_t, whh_t, bias) in params["lstm"]:
        H = whh_t.shape[0]
        h = jnp.zeros((B, H), jnp.float32)
        c = jnp.zeros((B, H), jnp.float32)
        outs = []
        for t in range(T):
            gates = h_seq[:, t, :] @ wih_t + h @ whh_t + bias
            i_g = jax.nn.sigmoid(gates[:, 0:H])
            f_g = jax.nn.sigmoid(gates[:, H:2 * H])
            g_g = jnp.tanh(gates[:, 2 * H:3 * H])
            o_g = jax.nn.sigmoid(gates[:, 3 * H:4 * H])
            c = f_g * c + i_g * g_g
            h = o_g * jnp.tanh(c)
            outs.append(h)
        h_seq = jnp.stack(outs, axis=1)
    wfc, bfc = params["fc"]
    return h_seq[:, -1, :] @ wfc + bfc


if __name__ == "__main__":
    key = jax.random.PRNGKey(0)
    kx, kp = jax.random.split(key)
    x = jax.random.normal(kx, (BATCH, SEQ, INPUT_SIZE), dtype=jnp.float32)
    params = init_params(kp)

    out = jax.jit(rnn_forward)(x, params)
    jax.block_until_ready(out)
    assert out.shape == (BATCH, NUM_CLASSES)

    ref = rnn_forward_ref(x, params)
    assert jnp.allclose(out, ref, atol=1e-4, rtol=1e-4), (out, ref)

    print("KERNEL_OK")
</pallas_src>

<mosaic_0001>
module attributes {stable_mosaic.version = 11 : i64} {
  func.func @fused_lstm_fc_kernel(%arg0: memref<16x9xf32, #tpu.memory_space<vmem>>, %arg1: memref<9x128xf32, #tpu.memory_space<vmem>>, %arg2: memref<32x128xf32, #tpu.memory_space<vmem>>, %arg3: memref<1x128xf32, #tpu.memory_space<vmem>>, %arg4: memref<32x128xf32, #tpu.memory_space<vmem>>, %arg5: memref<32x128xf32, #tpu.memory_space<vmem>>, %arg6: memref<1x128xf32, #tpu.memory_space<vmem>>, %arg7: memref<32x128xf32, #tpu.memory_space<vmem>>, %arg8: memref<32x128xf32, #tpu.memory_space<vmem>>, %arg9: memref<1x128xf32, #tpu.memory_space<vmem>>, %arg10: memref<32x9xf32, #tpu.memory_space<vmem>>, %arg11: memref<1x9xf32, #tpu.memory_space<vmem>>, %arg12: memref<2x9xf32, #tpu.memory_space<vmem>>) attributes {dimension_semantics = [], scalar_prefetch = 0 : i64, scratch_operands = 0 : i64, tpu.core_type = #tpu.core_type<tc>} {
    %0 = tpu.iota {dimensions = array<i32: 1>} : vector<2x128xi32>
    %c64_i32 = arith.constant 64 : i32
    %1 = vector.broadcast %c64_i32 : i32 to vector<2x128xi32>
    %2 = arith.cmpi sge, %0, %1 : vector<2x128xi32>
    %c96_i32 = arith.constant 96 : i32
    %3 = vector.broadcast %c96_i32 : i32 to vector<2x128xi32>
    %4 = arith.cmpi slt, %0, %3 : vector<2x128xi32>
    %5 = arith.andi %2, %4 : vector<2x128xi1>
    %c0 = arith.constant 0 : index
    %c0_0 = arith.constant 0 : index
    %6 = vector.load %arg0[%c0, %c0_0] : memref<16x9xf32, #tpu.memory_space<vmem>>, vector<16x9xf32>
    %c0_1 = arith.constant 0 : index
    %c0_2 = arith.constant 0 : index
    %7 = vector.load %arg1[%c0_1, %c0_2] : memref<9x128xf32, #tpu.memory_space<vmem>>, vector<9x128xf32>
    %cst = arith.constant dense<0.000000e+00> : vector<16x128xf32>
    %8 = tpu.matmul %6, %7, %cst {dimension_numbers = #tpu.dot_dimension_numbers<[1], [0], [0], [1], [0, 0, 1, 1], [], []>} : vector<16x9xf32>, vector<9x128xf32>, vector<16x128xf32> -> vector<16x128xf32>
    %c0_3 = arith.constant 0 : index
    %c0_4 = arith.constant 0 : index
    %9 = vector.load %arg2[%c0_3, %c0_4] : memref<32x128xf32, #tpu.memory_space<vmem>>, vector<32x128xf32>
    %c0_5 = arith.constant 0 : index
    %c0_6 = arith.constant 0 : index
    %10 = vector.load %arg3[%c0_5, %c0_6] : memref<1x128xf32, #tpu.memory_space<vmem>>, vector<1x128xf32>
    %cst_7 = arith.constant 0.000000e+00 : f32
    %11 = vector.broadcast %cst_7 : f32 to vector<2x32xf32>
    %cst_8 = arith.constant 0.000000e+00 : f32
    %12 = vector.broadcast %cst_8 : f32 to vector<2x32xf32>
    %13 = vector.extract_strided_slice %8 {offsets = [0, 0], sizes = [2, 128], strides = [1, 1]} : vector<16x128xf32> to vector<2x128xf32>
    %cst_9 = arith.constant dense<0.000000e+00> : vector<2x128xf32>
    %14 = tpu.matmul %11, %9, %cst_9 {dimension_numbers = #tpu.dot_dimension_numbers<[1], [0], [0], [1], [0, 0, 1, 1], [], []>} : vector<2x32xf32>, vector<32x128xf32>, vector<2x128xf32> -> vector<2x128xf32>
    %15 = arith.addf %13, %14 : vector<2x128xf32>
    %16 = vector.broadcast %10 : vector<1x128xf32> to vector<2x128xf32>
    %17 = arith.addf %15, %16 : vector<2x128xf32>
    %18 = math.tanh %17 : vector<2x128xf32>
    %19 = arith.negf %17 : vector<2x128xf32>
    %20 = math.exp %19 : vector<2x128xf32>
    %cst_10 = arith.constant 1.000000e+00 : f32
    %21 = vector.broadcast %cst_10 : f32 to vector<2x128xf32>
    %22 = arith.addf %21, %20 : vector<2x128xf32>
    %23 = arith.divf %21, %22 : vector<2x128xf32>
    %24 = arith.select %5, %18, %23 : vector<2x128xi1>, vector<2x128xf32>
    %25 = vector.extract_strided_slice %24 {offsets = [0, 0], sizes = [2, 32], strides = [1, 1]} : vector<2x128xf32> to vector<2x32xf32>
    %26 = vector.extract_strided_slice %24 {offsets = [0, 32], sizes = [2, 32], strides = [1, 1]} : vector<2x128xf32> to vector<2x32xf32>
    %27 = vector.extract_strided_slice %24 {offsets = [0, 64], sizes = [2, 32], strides = [1, 1]} : vector<2x128xf32> to vector<2x32xf32>
    %28 = vector.extract_strided_slice %24 {offsets = [0, 96], sizes = [2, 32], strides = [1, 1]} : vector<2x128xf32> to vector<2x32xf32>
    %29 = arith.mulf %26, %12 : vector<2x32xf32>
    %30 = arith.mulf %25, %27 : vector<2x32xf32>
    %31 = arith.addf %29, %30 : vector<2x32xf32>
    %32 = math.tanh %31 : vector<2x32xf32>
    %33 = arith.mulf %28, %32 : vector<2x32xf32>
    %34 = vector.extract_strided_slice %8 {offsets = [2, 0], sizes = [2, 128], strides = [1, 1]} : vector<16x128xf32> to vector<2x128xf32>
    %cst_11 = arith.constant dense<0.000000e+00> : vector<2x128xf32>
    %35 = tpu.matmul %33, %9, %cst_11 {dimension_numbers = #tpu.dot_dimension_numbers<[1], [0], [0], [1], [0, 0, 1, 1], [], []>} : vector<2x32xf32>, vector<32x128xf32>, vector<2x128xf32> -> vector<2x128xf32>
    %36 = arith.addf %34, %35 : vector<2x128xf32>
    %37 = vector.broadcast %10 : vector<1x128xf32> to vector<2x128xf32>
    %38 = arith.addf %36, %37 : vector<2x128xf32>
    %39 = math.tanh %38 : vector<2x128xf32>
    %40 = arith.negf %38 : vector<2x128xf32>
    %41 = math.exp %40 : vector<2x128xf32>
    %cst_12 = arith.constant 1.000000e+00 : f32
    %42 = vector.broadcast %cst_12 : f32 to vector<2x128xf32>
    %43 = arith.addf %42, %41 : vector<2x128xf32>
    %44 = arith.divf %42, %43 : vector<2x128xf32>
    %45 = arith.select %5, %39, %44 : vector<2x128xi1>, vector<2x128xf32>
    %46 = vector.extract_strided_slice %45 {offsets = [0, 0], sizes = [2, 32], strides = [1, 1]} : vector<2x128xf32> to vector<2x32xf32>
    %47 = vector.extract_strided_slice %45 {offsets = [0, 32], sizes = [2, 32], strides = [1, 1]} : vector<2x128xf32> to vector<2x32xf32>
    %48 = vector.extract_strided_slice %45 {offsets = [0, 64], sizes = [2, 32], strides = [1, 1]} : vector<2x128xf32> to vector<2x32xf32>
    %49 = vector.extract_strided_slice %45 {offsets = [0, 96], sizes = [2, 32], strides = [1, 1]} : vector<2x128xf32> to vector<2x32xf32>
    %50 = arith.mulf %47, %31 : vector<2x32xf32>
    %51 = arith.mulf %46, %48 : vector<2x32xf32>
    %52 = arith.addf %50, %51 : vector<2x32xf32>
    %53 = math.tanh %52 : vector<2x32xf32>
    %54 = arith.mulf %49, %53 : vector<2x32xf32>
    %55 = vector.extract_strided_slice %8 {offsets = [4, 0], sizes = [2, 128], strides = [1, 1]} : vector<16x128xf32> to vector<2x128xf32>
    %cst_13 = arith.constant dense<0.000000e+00> : vector<2x128xf32>
    %56 = tpu.matmul %54, %9, %cst_13 {dimension_numbers = #tpu.dot_dimension_numbers<[1], [0], [0], [1], [0, 0, 1, 1], [], []>} : vector<2x32xf32>, vector<32x128xf32>, vector<2x128xf32> -> vector<2x128xf32>
    %57 = arith.addf %55, %56 : vector<2x128xf32>
    %58 = vector.broadcast %10 : vector<1x128xf32> to vector<2x128xf32>
    %59 = arith.addf %57, %58 : vector<2x128xf32>
    %60 = math.tanh %59 : vector<2x128xf32>
    %61 = arith.negf %59 : vector<2x128xf32>
    %62 = math.exp %61 : vector<2x128xf32>
    %cst_14 = arith.constant 1.000000e+00 : f32
    %63 = vector.broadcast %cst_14 : f32 to vector<2x128xf32>
    %64 = arith.addf %63, %62 : vector<2x128xf32>
    %65 = arith.divf %63, %64 : vector<2x128xf32>
    %66 = arith.select %5, %60, %65 : vector<2x128xi1>, vector<2x128xf32>
    %67 = vector.extract_strided_slice %66 {offsets = [0, 0], sizes = [2, 32], strides = [1, 1]} : vector<2x128xf32> to vector<2x32xf32>
    %68 = vector.extract_strided_slice %66 {offsets = [0, 32], sizes = [2, 32], strides = [1, 1]} : vector<2x128xf32> to vector<2x32xf32>
    %69 = vector.extract_strided_slice %66 {offsets = [0, 64], sizes = [2, 32], strides = [1, 1]} : vector<2x128xf32> to vector<2x32xf32>
    %70 = vector.extract_strided_slice %66 {offsets = [0, 96], sizes = [2, 32], strides = [1, 1]} : vector<2x128xf32> to vector<2x32xf32>
    %71 = arith.mulf %68, %52 : vector<2x32xf32>
    %72 = arith.mulf %67, %69 : vector<2x32xf32>
    %73 = arith.addf %71, %72 : vector<2x32xf32>
    %74 = math.tanh %73 : vector<2x32xf32>
    %75 = arith.mulf %70, %74 : vector<2x32xf32>
    %76 = vector.extract_strided_slice %8 {offsets = [6, 0], sizes = [2, 128], strides = [1, 1]} : vector<16x128xf32> to vector<2x128xf32>
    %cst_15 = arith.constant dense<0.000000e+00> : vector<2x128xf32>
    %77 = tpu.matmul %75, %9, %cst_15 {dimension_numbers = #tpu.dot_dimension_numbers<[1], [0], [0], [1], [0, 0, 1, 1], [], []>} : vector<2x32xf32>, vector<32x128xf32>, vector<2x128xf32> -> vector<2x128xf32>
    %78 = arith.addf %76, %77 : vector<2x128xf32>
    %79 = vector.broadcast %10 : vector<1x128xf32> to vector<2x128xf32>
    %80 = arith.addf %78, %79 : vector<2x128xf32>
    %81 = math.tanh %80 : vector<2x128xf32>
    %82 = arith.negf %80 : vector<2x128xf32>
    %83 = math.exp %82 : vector<2x128xf32>
    %cst_16 = arith.constant 1.000000e+00 : f32
    %84 = vector.broadcast %cst_16 : f32 to vector<2x128xf32>
    %85 = arith.addf %84, %83 : vector<2x128xf32>
    %86 = arith.divf %84, %85 : vector<2x128xf32>
    %87 = arith.select %5, %81, %86 : vector<2x128xi1>, vector<2x128xf32>
    %88 = vector.extract_strided_slice %87 {offsets = [0, 0], sizes = [2, 32], strides = [1, 1]} : vector<2x128xf32> to vector<2x32xf32>
    %89 = vector.extract_strided_slice %87 {offsets = [0, 32], sizes = [2, 32], strides = [1, 1]} : vector<2x128xf32> to vector<2x32xf32>
    %90 = vector.extract_strided_slice %87 {offsets = [0, 64], sizes = [2, 32], strides = [1, 1]} : vector<2x128xf32> to vector<2x32xf32>
    %91 = vector.extract_strided_slice %87 {offsets = [0, 96], sizes = [2, 32], strides = [1, 1]} : vector<2x128xf32> to vector<2x32xf32>
    %92 = arith.mulf %89, %73 : vector<2x32xf32>
    %93 = arith.mulf %88, %90 : vector<2x32xf32>
    %94 = arith.addf %92, %93 : vector<2x32xf32>
    %95 = math.tanh %94 : vector<2x32xf32>
    %96 = arith.mulf %91, %95 : vector<2x32xf32>
    %97 = vector.extract_strided_slice %8 {offsets = [8, 0], sizes = [2, 128], strides = [1, 1]} : vector<16x128xf32> to vector<2x128xf32>
    %cst_17 = arith.constant dense<0.000000e+00> : vector<2x128xf32>
    %98 = tpu.matmul %96, %9, %cst_17 {dimension_numbers = #tpu.dot_dimension_numbers<[1], [0], [0], [1], [0, 0, 1, 1], [], []>} : vector<2x32xf32>, vector<32x128xf32>, vector<2x128xf32> -> vector<2x128xf32>
    %99 = arith.addf %97, %98 : vector<2x128xf32>
    %100 = vector.broadcast %10 : vector<1x128xf32> to vector<2x128xf32>
    %101 = arith.addf %99, %100 : vector<2x128xf32>
    %102 = math.tanh %101 : vector<2x128xf32>
    %103 = arith.negf %101 : vector<2x128xf32>
    %104 = math.exp %103 : vector<2x128xf32>
    %cst_18 = arith.constant 1.000000e+00 : f32
    %105 = vector.broadcast %cst_18 : f32 to vector<2x128xf32>
    %106 = arith.addf %105, %104 : vector<2x128xf32>
    %107 = arith.divf %105, %106 : vector<2x128xf32>
    %108 = arith.select %5, %102, %107 : vector<2x128xi1>, vector<2x128xf32>
    %109 = vector.extract_strided_slice %108 {offsets = [0, 0], sizes = [2, 32], strides = [1, 1]} : vector<2x128xf32> to vector<2x32xf32>
    %110 = vector.extract_strided_slice %108 {offsets = [0, 32], sizes = [2, 32], strides = [1, 1]} : vector<2x128xf32> to vector<2x32xf32>
    %111 = vector.extract_strided_slice %108 {offsets = [0, 64], sizes = [2, 32], strides = [1, 1]} : vector<2x128xf32> to vector<2x32xf32>
    %112 = vector.extract_strided_slice %108 {offsets = [0, 96], sizes = [2, 32], strides = [1, 1]} : vector<2x128xf32> to vector<2x32xf32>
    %113 = arith.mulf %110, %94 : vector<2x32xf32>
    %114 = arith.mulf %109, %111 : vector<2x32xf32>
    %115 = arith.addf %113, %114 : vector<2x32xf32>
    %116 = math.tanh %115 : vector<2x32xf32>
    %117 = arith.mulf %112, %116 : vector<2x32xf32>
    %118 = vector.extract_strided_slice %8 {offsets = [10, 0], sizes = [2, 128], strides = [1, 1]} : vector<16x128xf32> to vector<2x128xf32>
    %cst_19 = arith.constant dense<0.000000e+00> : vector<2x128xf32>
    %119 = tpu.matmul %117, %9, %cst_19 {dimension_numbers = #tpu.dot_dimension_numbers<[1], [0], [0], [1], [0, 0, 1, 1], [], []>} : vector<2x32xf32>, vector<32x128xf32>, vector<2x128xf32> -> vector<2x128xf32>
    %120 = arith.addf %118, %119 : vector<2x128xf32>
    %121 = vector.broadcast %10 : vector<1x128xf32> to vector<2x128xf32>
    %122 = arith.addf %120, %121 : vector<2x128xf32>
    %123 = math.tanh %122 : vector<2x128xf32>
    %124 = arith.negf %122 : vector<2x128xf32>
    %125 = math.exp %124 : vector<2x128xf32>
    %cst_20 = arith.constant 1.000000e+00 : f32
    %126 = vector.broadcast %cst_20 : f32 to vector<2x128xf32>
    %127 = arith.addf %126, %125 : vector<2x128xf32>
    %128 = arith.divf %126, %127 : vector<2x128xf32>
    %129 = arith.select %5, %123, %128 : vector<2x128xi1>, vector<2x128xf32>
    %130 = vector.extract_strided_slice %129 {offsets = [0, 0], sizes = [2, 32], strides = [1, 1]} : vector<2x128xf32> to vector<2x32xf32>
    %131 = vector.extract_strided_slice %129 {offsets = [0, 32], sizes = [2, 32], strides = [1, 1]} : vector<2x128xf32> to vector<2x32xf32>
    %132 = vector.extract_strided_slice %129 {offsets = [0, 64], sizes = [2, 32], strides = [1, 1]} : vector<2x128xf32> to vector<2x32xf32>
    %133 = vector.extract_strided_slice %129 {offsets = [0, 96], sizes = [2, 32], strides = [1, 1]} : vector<2x128xf32> to vector<2x32xf32>
    %134 = arith.mulf %131, %115 : vector<2x32xf32>
    %135 = arith.mulf %130, %132 : vector<2x32xf32>
    %136 = arith.addf %134, %135 : vector<2x32xf32>
    %137 = math.tanh %136 : vector<2x32xf32>
    %138 = arith.mulf %133, %137 : vector<2x32xf32>
    %139 = vector.extract_strided_slice %8 {offsets = [12, 0], sizes = [2, 128], strides = [1, 1]} : vector<16x128xf32> to vector<2x128xf32>
    %cst_21 = arith.constant dense<0.000000e+00> : vector<2x128xf32>
    %140 = tpu.matmul %138, %9, %cst_21 {dimension_numbers = #tpu.dot_dimension_numbers<[1], [0], [0], [1], [0, 0, 1, 1], [], []>} : vector<2x32xf32>, vector<32x128xf32>, vector<2x128xf32> -> vector<2x128xf32>
    %141 = arith.addf %139, %140 : vector<2x128xf32>
    %142 = vector.broadcast %10 : vector<1x128xf32> to vector<2x128xf32>
    %143 = arith.addf %141, %142 : vector<2x128xf32>
    %144 = math.tanh %143 : vector<2x128xf32>
    %145 = arith.negf %143 : vector<2x128xf32>
    %146 = math.exp %145 : vector<2x128xf32>
    %cst_22 = arith.constant 1.000000e+00 : f32
    %147 = vector.broadcast %cst_22 : f32 to vector<2x128xf32>
    %148 = arith.addf %147, %146 : vector<2x128xf32>
    %149 = arith.divf %147, %148 : vector<2x128xf32>
    %150 = arith.select %5, %144, %149 : vector<2x128xi1>, vector<2x128xf32>
    %151 = vector.extract_strided_slice %150 {offsets = [0, 0], sizes = [2, 32], strides = [1, 1]} : vector<2x128xf32> to vector<2x32xf32>
    %152 = vector.extract_strided_slice %150 {offsets = [0, 32], sizes = [2, 32], strides = [1, 1]} : vector<2x128xf32> to vector<2x32xf32>
    %153 = vector.extract_strided_slice %150 {offsets = [0, 64], sizes = [2, 32], strides = [1, 1]} : vector<2x128xf32> to vector<2x32xf32>
    %154 = vector.extract_strided_slice %150 {offsets = [0, 96], sizes = [2, 32], strides = [1, 1]} : vector<2x128xf32> to vector<2x32xf32>
    %155 = arith.mulf %152, %136 : vector<2x32xf32>
    %156 = arith.mulf %151, %153 : vector<2x32xf32>
    %157 = arith.addf %155, %156 : vector<2x32xf32>
    %158 = math.tanh %157 : vector<2x32xf32>
    %159 = arith.mulf %154, %158 : vector<2x32xf32>
    %160 = vector.extract_strided_slice %8 {offsets = [14, 0], sizes = [2, 128], strides = [1, 1]} : vector<16x128xf32> to vector<2x128xf32>
    %cst_23 = arith.constant dense<0.000000e+00> : vector<2x128xf32>
    %161 = tpu.matmul %159, %9, %cst_23 {dimension_numbers = #tpu.dot_dimension_numbers<[1], [0], [0], [1], [0, 0, 1, 1], [], []>} : vector<2x32xf32>, vector<32x128xf32>, vector<2x128xf32> -> vector<2x128xf32>
    %162 = arith.addf %160, %161 : vector<2x128xf32>
    %163 = vector.broadcast %10 : vector<1x128xf32> to vector<2x128xf32>
    %164 = arith.addf %162, %163 : vector<2x128xf32>
    %165 = math.tanh %164 : vector<2x128xf32>
    %166 = arith.negf %164 : vector<2x128xf32>
    %167 = math.exp %166 : vector<2x128xf32>
    %cst_24 = arith.constant 1.000000e+00 : f32
    %168 = vector.broadcast %cst_24 : f32 to vector<2x128xf32>
    %169 = arith.addf %168, %167 : vector<2x128xf32>
    %170 = arith.divf %168, %169 : vector<2x128xf32>
    %171 = arith.select %5, %165, %170 : vector<2x128xi1>, vector<2x128xf32>
    %172 = vector.extract_strided_slice %171 {offsets = [0, 0], sizes = [2, 32], strides = [1, 1]} : vector<2x128xf32> to vector<2x32xf32>
    %173 = vector.extract_strided_slice %171 {offsets = [0, 32], sizes = [2, 32], strides = [1, 1]} : vector<2x128xf32> to vector<2x32xf32>
    %174 = vector.extract_strided_slice %171 {offsets = [0, 64], sizes = [2, 32], strides = [1, 1]} : vector<2x128xf32> to vector<2x32xf32>
    %175 = vector.extract_strided_slice %171 {offsets = [0, 96], sizes = [2, 32], strides = [1, 1]} : vector<2x128xf32> to vector<2x32xf32>
    %176 = arith.mulf %173, %157 : vector<2x32xf32>
    %177 = arith.mulf %172, %174 : vector<2x32xf32>
    %178 = arith.addf %176, %177 : vector<2x32xf32>
    %179 = math.tanh %178 : vector<2x32xf32>
    %180 = arith.mulf %175, %179 : vector<2x32xf32>
    %181 = tpu.concatenate %33, %54, %75, %96, %117, %138, %159, %180 in 0 : vector<2x32xf32>, vector<2x32xf32>, vector<2x32xf32>, vector<2x32xf32>, vector<2x32xf32>, vector<2x32xf32>, vector<2x32xf32>, vector<2x32xf32> -> vector<16x32xf32>
    %c0_25 = arith.constant 0 : index
    %c0_26 = arith.constant 0 : index
    %182 = vector.load %arg4[%c0_25, %c0_26] : memref<32x128xf32, #tpu.memory_space<vmem>>, vector<32x128xf32>
    %cst_27 = arith.constant dense<0.000000e+00> : vector<16x128xf32>
    %183 = tpu.matmul %181, %182, %cst_27 {dimension_numbers = #tpu.dot_dimension_numbers<[1], [0], [0], [1], [0, 0, 1, 1], [], []>} : vector<16x32xf32>, vector<32x128xf32>, vector<16x128xf32> -> vector<16x128xf32>
    %c0_28 = arith.constant 0 : index
    %c0_29 = arith.constant 0 : index
    %184 = vector.load %arg5[%c0_28, %c0_29] : memref<32x128xf32, #tpu.memory_space<vmem>>, vector<32x128xf32>
    %c0_30 = arith.constant 0 : index
    %c0_31 = arith.constant 0 : index
    %185 = vector.load %arg6[%c0_30, %c0_31] : memref<1x128xf32, #tpu.memory_space<vmem>>, vector<1x128xf32>
    %cst_32 = arith.constant 0.000000e+00 : f32
    %186 = vector.broadcast %cst_32 : f32 to vector<2x32xf32>
    %cst_33 = arith.constant 0.000000e+00 : f32
    %187 = vector.broadcast %cst_33 : f32 to vector<2x32xf32>
    %188 = vector.extract_strided_slice %183 {offsets = [0, 0], sizes = [2, 128], strides = [1, 1]} : vector<16x128xf32> to vector<2x128xf32>
    %cst_34 = arith.constant dense<0.000000e+00> : vector<2x128xf32>
    %189 = tpu.matmul %186, %184, %cst_34 {dimension_numbers = #tpu.dot_dimension_numbers<[1], [0], [0], [1], [0, 0, 1, 1], [], []>} : vector<2x32xf32>, vector<32x128xf32>, vector<2x128xf32> -> vector<2x128xf32>
    %190 = arith.addf %188, %189 : vector<2x128xf32>
    %191 = vector.broadcast %185 : vector<1x128xf32> to vector<2x128xf32>
    %192 = arith.addf %190, %191 : vector<2x128xf32>
    %193 = math.tanh %192 : vector<2x128xf32>
    %194 = arith.negf %192 : vector<2x128xf32>
    %195 = math.exp %194 : vector<2x128xf32>
    %cst_35 = arith.constant 1.000000e+00 : f32
    %196 = vector.broadcast %cst_35 : f32 to vector<2x128xf32>
    %197 = arith.addf %196, %195 : vector<2x128xf32>
    %198 = arith.divf %196, %197 : vector<2x128xf32>
    %199 = arith.select %5, %193, %198 : vector<2x128xi1>, vector<2x128xf32>
    %200 = vector.extract_strided_slice %199 {offsets = [0, 0], sizes = [2, 32], strides = [1, 1]} : vector<2x128xf32> to vector<2x32xf32>
    %201 = vector.extract_strided_slice %199 {offsets = [0, 32], sizes = [2, 32], strides = [1, 1]} : vector<2x128xf32> to vector<2x32xf32>
    %202 = vector.extract_strided_slice %199 {offsets = [0, 64], sizes = [2, 32], strides = [1, 1]} : vector<2x128xf32> to vector<2x32xf32>
    %203 = vector.extract_strided_slice %199 {offsets = [0, 96], sizes = [2, 32], strides = [1, 1]} : vector<2x128xf32> to vector<2x32xf32>
    %204 = arith.mulf %201, %187 : vector<2x32xf32>
    %205 = arith.mulf %200, %202 : vector<2x32xf32>
    %206 = arith.addf %204, %205 : vector<2x32xf32>
    %207 = math.tanh %206 : vector<2x32xf32>
    %208 = arith.mulf %203, %207 : vector<2x32xf32>
    %209 = vector.extract_strided_slice %183 {offsets = [2, 0], sizes = [2, 128], strides = [1, 1]} : vector<16x128xf32> to vector<2x128xf32>
    %cst_36 = arith.constant dense<0.000000e+00> : vector<2x128xf32>
    %210 = tpu.matmul %208, %184, %cst_36 {dimension_numbers = #tpu.dot_dimension_numbers<[1], [0], [0], [1], [0, 0, 1, 1], [], []>} : vector<2x32xf32>, vector<32x128xf32>, vector<2x128xf32> -> vector<2x128xf32>
    %211 = arith.addf %209, %210 : vector<2x128xf32>
    %212 = vector.broadcast %185 : vector<1x128xf32> to vector<2x128xf32>
    %213 = arith.addf %211, %212 : vector<2x128xf32>
    %214 = math.tanh %213 : vector<2x128xf32>
    %215 = arith.negf %213 : vector<2x128xf32>
    %216 = math.exp %215 : vector<2x128xf32>
    %cst_37 = arith.constant 1.000000e+00 : f32
    %217 = vector.broadcast %cst_37 : f32 to vector<2x128xf32>
    %218 = arith.addf %217, %216 : vector<2x128xf32>
    %219 = arith.divf %217, %218 : vector<2x128xf32>
    %220 = arith.select %5, %214, %219 : vector<2x128xi1>, vector<2x128xf32>
    %221 = vector.extract_strided_slice %220 {offsets = [0, 0], sizes = [2, 32], strides = [1, 1]} : vector<2x128xf32> to vector<2x32xf32>
    %222 = vector.extract_strided_slice %220 {offsets = [0, 32], sizes = [2, 32], strides = [1, 1]} : vector<2x128xf32> to vector<2x32xf32>
    %223 = vector.extract_strided_slice %220 {offsets = [0, 64], sizes = [2, 32], strides = [1, 1]} : vector<2x128xf32> to vector<2x32xf32>
    %224 = vector.extract_strided_slice %220 {offsets = [0, 96], sizes = [2, 32], strides = [1, 1]} : vector<2x128xf32> to vector<2x32xf32>
    %225 = arith.mulf %222, %206 : vector<2x32xf32>
    %226 = arith.mulf %221, %223 : vector<2x32xf32>
    %227 = arith.addf %225, %226 : vector<2x32xf32>
    %228 = math.tanh %227 : vector<2x32xf32>
    %229 = arith.mulf %224, %228 : vector<2x32xf32>
    %230 = vector.extract_strided_slice %183 {offsets = [4, 0], sizes = [2, 128], strides = [1, 1]} : vector<16x128xf32> to vector<2x128xf32>
    %cst_38 = arith.constant dense<0.000000e+00> : vector<2x128xf32>
    %231 = tpu.matmul %229, %184, %cst_38 {dimension_numbers = #tpu.dot_dimension_numbers<[1], [0], [0], [1], [0, 0, 1, 1], [], []>} : vector<2x32xf32>, vector<32x128xf32>, vector<2x128xf32> -> vector<2x128xf32>
    %232 = arith.addf %230, %231 : vector<2x128xf32>
    %233 = vector.broadcast %185 : vector<1x128xf32> to vector<2x128xf32>
    %234 = arith.addf %232, %233 : vector<2x128xf32>
    %235 = math.tanh %234 : vector<2x128xf32>
    %236 = arith.negf %234 : vector<2x128xf32>
    %237 = math.exp %236 : vector<2x128xf32>
    %cst_39 = arith.constant 1.000000e+00 : f32
    %238 = vector.broadcast %cst_39 : f32 to vector<2x128xf32>
    %239 = arith.addf %238, %237 : vector<2x128xf32>
    %240 = arith.divf %238, %239 : vector<2x128xf32>
    %241 = arith.select %5, %235, %240 : vector<2x128xi1>, vector<2x128xf32>
    %242 = vector.extract_strided_slice %241 {offsets = [0, 0], sizes = [2, 32], strides = [1, 1]} : vector<2x128xf32> to vector<2x32xf32>
    %243 = vector.extract_strided_slice %241 {offsets = [0, 32], sizes = [2, 32], strides = [1, 1]} : vector<2x128xf32> to vector<2x32xf32>
    %244 = vector.extract_strided_slice %241 {offsets = [0, 64], sizes = [2, 32], strides = [1, 1]} : vector<2x128xf32> to vector<2x32xf32>
    %245 = vector.extract_strided_slice %241 {offsets = [0, 96], sizes = [2, 32], strides = [1, 1]} : vector<2x128xf32> to vector<2x32xf32>
    %246 = arith.mulf %243, %227 : vector<2x32xf32>
    %247 = arith.mulf %242, %244 : vector<2x32xf32>
    %248 = arith.addf %246, %247 : vector<2x32xf32>
    %249 = math.tanh %248 : vector<2x32xf32>
    %250 = arith.mulf %245, %249 : vector<2x32xf32>
    %251 = vector.extract_strided_slice %183 {offsets = [6, 0], sizes = [2, 128], strides = [1, 1]} : vector<16x128xf32> to vector<2x128xf32>
    %cst_40 = arith.constant dense<0.000000e+00> : vector<2x128xf32>
    %252 = tpu.matmul %250, %184, %cst_40 {dimension_numbers = #tpu.dot_dimension_numbers<[1], [0], [0], [1], [0, 0, 1, 1], [], []>} : vector<2x32xf32>, vector<32x128xf32>, vector<2x128xf32> -> vector<2x128xf32>
    %253 = arith.addf %251, %252 : vector<2x128xf32>
    %254 = vector.broadcast %185 : vector<1x128xf32> to vector<2x128xf32>
    %255 = arith.addf %253, %254 : vector<2x128xf32>
    %256 = math.tanh %255 : vector<2x128xf32>
    %257 = arith.negf %255 : vector<2x128xf32>
    %258 = math.exp %257 : vector<2x128xf32>
    %cst_41 = arith.constant 1.000000e+00 : f32
    %259 = vector.broadcast %cst_41 : f32 to vector<2x128xf32>
    %260 = arith.addf %259, %258 : vector<2x128xf32>
    %261 = arith.divf %259, %260 : vector<2x128xf32>
    %262 = arith.select %5, %256, %261 : vector<2x128xi1>, vector<2x128xf32>
    %263 = vector.extract_strided_slice %262 {offsets = [0, 0], sizes = [2, 32], strides = [1, 1]} : vector<2x128xf32> to vector<2x32xf32>
    %264 = vector.extract_strided_slice %262 {offsets = [0, 32], sizes = [2, 32], strides = [1, 1]} : vector<2x128xf32> to vector<2x32xf32>
    %265 = vector.extract_strided_slice %262 {offsets = [0, 64], sizes = [2, 32], strides = [1, 1]} : vector<2x128xf32> to vector<2x32xf32>
    %266 = vector.extract_strided_slice %262 {offsets = [0, 96], sizes = [2, 32], strides = [1, 1]} : vector<2x128xf32> to vector<2x32xf32>
    %267 = arith.mulf %264, %248 : vector<2x32xf32>
    %268 = arith.mulf %263, %265 : vector<2x32xf32>
    %269 = arith.addf %267, %268 : vector<2x32xf32>
    %270 = math.tanh %269 : vector<2x32xf32>
    %271 = arith.mulf %266, %270 : vector<2x32xf32>
    %272 = vector.extract_strided_slice %183 {offsets = [8, 0], sizes = [2, 128], strides = [1, 1]} : vector<16x128xf32> to vector<2x128xf32>
    %cst_42 = arith.constant dense<0.000000e+00> : vector<2x128xf32>
    %273 = tpu.matmul %271, %184, %cst_42 {dimension_numbers = #tpu.dot_dimension_numbers<[1], [0], [0], [1], [0, 0, 1, 1], [], []>} : vector<2x32xf32>, vector<32x128xf32>, vector<2x128xf32> -> vector<2x128xf32>
    %274 = arith.addf %272, %273 : vector<2x128xf32>
    %275 = vector.broadcast %185 : vector<1x128xf32> to vector<2x128xf32>
    %276 = arith.addf %274, %275 : vector<2x128xf32>
    %277 = math.tanh %276 : vector<2x128xf32>
    %278 = arith.negf %276 : vector<2x128xf32>
    %279 = math.exp %278 : vector<2x128xf32>
    %cst_43 = arith.constant 1.000000e+00 : f32
    %280 = vector.broadcast %cst_43 : f32 to vector<2x128xf32>
    %281 = arith.addf %280, %279 : vector<2x128xf32>
    %282 = arith.divf %280, %281 : vector<2x128xf32>
    %283 = arith.select %5, %277, %282 : vector<2x128xi1>, vector<2x128xf32>
    %284 = vector.extract_strided_slice %283 {offsets = [0, 0], sizes = [2, 32], strides = [1, 1]} : vector<2x128xf32> to vector<2x32xf32>
    %285 = vector.extract_strided_slice %283 {offsets = [0, 32], sizes = [2, 32], strides = [1, 1]} : vector<2x128xf32> to vector<2x32xf32>
    %286 = vector.extract_strided_slice %283 {offsets = [0, 64], sizes = [2, 32], strides = [1, 1]} : vector<2x128xf32> to vector<2x32xf32>
    %287 = vector.extract_strided_slice %283 {offsets = [0, 96], sizes = [2, 32], strides = [1, 1]} : vector<2x128xf32> to vector<2x32xf32>
    %288 = arith.mulf %285, %269 : vector<2x32xf32>
    %289 = arith.mulf %284, %286 : vector<2x32xf32>
    %290 = arith.addf %288, %289 : vector<2x32xf32>
    %291 = math.tanh %290 : vector<2x32xf32>
    %292 = arith.mulf %287, %291 : vector<2x32xf32>
    %293 = vector.extract_strided_slice %183 {offsets = [10, 0], sizes = [2, 128], strides = [1, 1]} : vector<16x128xf32> to vector<2x128xf32>
    %cst_44 = arith.constant dense<0.000000e+00> : vector<2x128xf32>
    %294 = tpu.matmul %292, %184, %cst_44 {dimension_numbers = #tpu.dot_dimension_numbers<[1], [0], [0], [1], [0, 0, 1, 1], [], []>} : vector<2x32xf32>, vector<32x128xf32>, vector<2x128xf32> -> vector<2x128xf32>
    %295 = arith.addf %293, %294 : vector<2x128xf32>
    %296 = vector.broadcast %185 : vector<1x128xf32> to vector<2x128xf32>
    %297 = arith.addf %295, %296 : vector<2x128xf32>
    %298 = math.tanh %297 : vector<2x128xf32>
    %299 = arith.negf %297 : vector<2x128xf32>
    %300 = math.exp %299 : vector<2x128xf32>
    %cst_45 = arith.constant 1.000000e+00 : f32
    %301 = vector.broadcast %cst_45 : f32 to vector<2x128xf32>
    %302 = arith.addf %301, %300 : vector<2x128xf32>
    %303 = arith.divf %301, %302 : vector<2x128xf32>
    %304 = arith.select %5, %298, %303 : vector<2x128xi1>, vector<2x128xf32>
    %305 = vector.extract_strided_slice %304 {offsets = [0, 0], sizes = [2, 32], strides = [1, 1]} : vector<2x128xf32> to vector<2x32xf32>
    %306 = vector.extract_strided_slice %304 {offsets = [0, 32], sizes = [2, 32], strides = [1, 1]} : vector<2x128xf32> to vector<2x32xf32>
    %307 = vector.extract_strided_slice %304 {offsets = [0, 64], sizes = [2, 32], strides = [1, 1]} : vector<2x128xf32> to vector<2x32xf32>
    %308 = vector.extract_strided_slice %304 {offsets = [0, 96], sizes = [2, 32], strides = [1, 1]} : vector<2x128xf32> to vector<2x32xf32>
    %309 = arith.mulf %306, %290 : vector<2x32xf32>
    %310 = arith.mulf %305, %307 : vector<2x32xf32>
    %311 = arith.addf %309, %310 : vector<2x32xf32>
    %312 = math.tanh %311 : vector<2x32xf32>
    %313 = arith.mulf %308, %312 : vector<2x32xf32>
    %314 = vector.extract_strided_slice %183 {offsets = [12, 0], sizes = [2, 128], strides = [1, 1]} : vector<16x128xf32> to vector<2x128xf32>
    %cst_46 = arith.constant dense<0.000000e+00> : vector<2x128xf32>
    %315 = tpu.matmul %313, %184, %cst_46 {dimension_numbers = #tpu.dot_dimension_numbers<[1], [0], [0], [1], [0, 0, 1, 1], [], []>} : vector<2x32xf32>, vector<32x128xf32>, vector<2x128xf32> -> vector<2x128xf32>
    %316 = arith.addf %314, %315 : vector<2x128xf32>
    %317 = vector.broadcast %185 : vector<1x128xf32> to vector<2x128xf32>
    %318 = arith.addf %316, %317 : vector<2x128xf32>
    %319 = math.tanh %318 : vector<2x128xf32>
    %320 = arith.negf %318 : vector<2x128xf32>
    %321 = math.exp %320 : vector<2x128xf32>
    %cst_47 = arith.constant 1.000000e+00 : f32
    %322 = vector.broadcast %cst_47 : f32 to vector<2x128xf32>
    %323 = arith.addf %322, %321 : vector<2x128xf32>
    %324 = arith.divf %322, %323 : vector<2x128xf32>
    %325 = arith.select %5, %319, %324 : vector<2x128xi1>, vector<2x128xf32>
    %326 = vector.extract_strided_slice %325 {offsets = [0, 0], sizes = [2, 32], strides = [1, 1]} : vector<2x128xf32> to vector<2x32xf32>
    %327 = vector.extract_strided_slice %325 {offsets = [0, 32], sizes = [2, 32], strides = [1, 1]} : vector<2x128xf32> to vector<2x32xf32>
    %328 = vector.extract_strided_slice %325 {offsets = [0, 64], sizes = [2, 32], strides = [1, 1]} : vector<2x128xf32> to vector<2x32xf32>
    %329 = vector.extract_strided_slice %325 {offsets = [0, 96], sizes = [2, 32], strides = [1, 1]} : vector<2x128xf32> to vector<2x32xf32>
    %330 = arith.mulf %327, %311 : vector<2x32xf32>
    %331 = arith.mulf %326, %328 : vector<2x32xf32>
    %332 = arith.addf %330, %331 : vector<2x32xf32>
    %333 = math.tanh %332 : vector<2x32xf32>
    %334 = arith.mulf %329, %333 : vector<2x32xf32>
    %335 = vector.extract_strided_slice %183 {offsets = [14, 0], sizes = [2, 128], strides = [1, 1]} : vector<16x128xf32> to vector<2x128xf32>
    %cst_48 = arith.constant dense<0.000000e+00> : vector<2x128xf32>
    %336 = tpu.matmul %334, %184, %cst_48 {dimension_numbers = #tpu.dot_dimension_numbers<[1], [0], [0], [1], [0, 0, 1, 1], [], []>} : vector<2x32xf32>, vector<32x128xf32>, vector<2x128xf32> -> vector<2x128xf32>
    %337 = arith.addf %335, %336 : vector<2x128xf32>
    %338 = vector.broadcast %185 : vector<1x128xf32> to vector<2x128xf32>
    %339 = arith.addf %337, %338 : vector<2x128xf32>
    %340 = math.tanh %339 : vector<2x128xf32>
    %341 = arith.negf %339 : vector<2x128xf32>
    %342 = math.exp %341 : vector<2x128xf32>
    %cst_49 = arith.constant 1.000000e+00 : f32
    %343 = vector.broadcast %cst_49 : f32 to vector<2x128xf32>
    %344 = arith.addf %343, %342 : vector<2x128xf32>
    %345 = arith.divf %343, %344 : vector<2x128xf32>
    %346 = arith.select %5, %340, %345 : vector<2x128xi1>, vector<2x128xf32>
    %347 = vector.extract_strided_slice %346 {offsets = [0, 0], sizes = [2, 32], strides = [1, 1]} : vector<2x128xf32> to vector<2x32xf32>
    %348 = vector.extract_strided_slice %346 {offsets = [0, 32], sizes = [2, 32], strides = [1, 1]} : vector<2x128xf32> to vector<2x32xf32>
    %349 = vector.extract_strided_slice %346 {offsets = [0, 64], sizes = [2, 32], strides = [1, 1]} : vector<2x128xf32> to vector<2x32xf32>
    %350 = vector.extract_strided_slice %346 {offsets = [0, 96], sizes = [2, 32], strides = [1, 1]} : vector<2x128xf32> to vector<2x32xf32>
    %351 = arith.mulf %348, %332 : vector<2x32xf32>
    %352 = arith.mulf %347, %349 : vector<2x32xf32>
    %353 = arith.addf %351, %352 : vector<2x32xf32>
    %354 = math.tanh %353 : vector<2x32xf32>
    %355 = arith.mulf %350, %354 : vector<2x32xf32>
    %356 = tpu.concatenate %208, %229, %250, %271, %292, %313, %334, %355 in 0 : vector<2x32xf32>, vector<2x32xf32>, vector<2x32xf32>, vector<2x32xf32>, vector<2x32xf32>, vector<2x32xf32>, vector<2x32xf32>, vector<2x32xf32> -> vector<16x32xf32>
    %c0_50 = arith.constant 0 : index
    %c0_51 = arith.constant 0 : index
    %357 = vector.load %arg7[%c0_50, %c0_51] : memref<32x128xf32, #tpu.memory_space<vmem>>, vector<32x128xf32>
    %cst_52 = arith.constant dense<0.000000e+00> : vector<16x128xf32>
    %358 = tpu.matmul %356, %357, %cst_52 {dimension_numbers = #tpu.dot_dimension_numbers<[1], [0], [0], [1], [0, 0, 1, 1], [], []>} : vector<16x32xf32>, vector<32x128xf32>, vector<16x128xf32> -> vector<16x128xf32>
    %c0_53 = arith.constant 0 : index
    %c0_54 = arith.constant 0 : index
    %359 = vector.load %arg8[%c0_53, %c0_54] : memref<32x128xf32, #tpu.memory_space<vmem>>, vector<32x128xf32>
    %c0_55 = arith.constant 0 : index
    %c0_56 = arith.constant 0 : index
    %360 = vector.load %arg9[%c0_55, %c0_56] : memref<1x128xf32, #tpu.memory_space<vmem>>, vector<1x128xf32>
    %cst_57 = arith.constant 0.000000e+00 : f32
    %361 = vector.broadcast %cst_57 : f32 to vector<2x32xf32>
    %cst_58 = arith.constant 0.000000e+00 : f32
    %362 = vector.broadcast %cst_58 : f32 to vector<2x32xf32>
    %363 = vector.extract_strided_slice %358 {offsets = [0, 0], sizes = [2, 128], strides = [1, 1]} : vector<16x128xf32> to vector<2x128xf32>
    %cst_59 = arith.constant dense<0.000000e+00> : vector<2x128xf32>
    %364 = tpu.matmul %361, %359, %cst_59 {dimension_numbers = #tpu.dot_dimension_numbers<[1], [0], [0], [1], [0, 0, 1, 1], [], []>} : vector<2x32xf32>, vector<32x128xf32>, vector<2x128xf32> -> vector<2x128xf32>
    %365 = arith.addf %363, %364 : vector<2x128xf32>
    %366 = vector.broadcast %360 : vector<1x128xf32> to vector<2x128xf32>
    %367 = arith.addf %365, %366 : vector<2x128xf32>
    %368 = math.tanh %367 : vector<2x128xf32>
    %369 = arith.negf %367 : vector<2x128xf32>
    %370 = math.exp %369 : vector<2x128xf32>
    %cst_60 = arith.constant 1.000000e+00 : f32
    %371 = vector.broadcast %cst_60 : f32 to vector<2x128xf32>
    %372 = arith.addf %371, %370 : vector<2x128xf32>
    %373 = arith.divf %371, %372 : vector<2x128xf32>
    %374 = arith.select %5, %368, %373 : vector<2x128xi1>, vector<2x128xf32>
    %375 = vector.extract_strided_slice %374 {offsets = [0, 0], sizes = [2, 32], strides = [1, 1]} : vector<2x128xf32> to vector<2x32xf32>
    %376 = vector.extract_strided_slice %374 {offsets = [0, 32], sizes = [2, 32], strides = [1, 1]} : vector<2x128xf32> to vector<2x32xf32>
    %377 = vector.extract_strided_slice %374 {offsets = [0, 64], sizes = [2, 32], strides = [1, 1]} : vector<2x128xf32> to vector<2x32xf32>
    %378 = vector.extract_strided_slice %374 {offsets = [0, 96], sizes = [2, 32], strides = [1, 1]} : vector<2x128xf32> to vector<2x32xf32>
    %379 = arith.mulf %376, %362 : vector<2x32xf32>
    %380 = arith.mulf %375, %377 : vector<2x32xf32>
    %381 = arith.addf %379, %380 : vector<2x32xf32>
    %382 = math.tanh %381 : vector<2x32xf32>
    %383 = arith.mulf %378, %382 : vector<2x32xf32>
    %384 = vector.extract_strided_slice %358 {offsets = [2, 0], sizes = [2, 128], strides = [1, 1]} : vector<16x128xf32> to vector<2x128xf32>
    %cst_61 = arith.constant dense<0.000000e+00> : vector<2x128xf32>
    %385 = tpu.matmul %383, %359, %cst_61 {dimension_numbers = #tpu.dot_dimension_numbers<[1], [0], [0], [1], [0, 0, 1, 1], [], []>} : vector<2x32xf32>, vector<32x128xf32>, vector<2x128xf32> -> vector<2x128xf32>
    %386 = arith.addf %384, %385 : vector<2x128xf32>
    %387 = vector.broadcast %360 : vector<1x128xf32> to vector<2x128xf32>
    %388 = arith.addf %386, %387 : vector<2x128xf32>
    %389 = math.tanh %388 : vector<2x128xf32>
    %390 = arith.negf %388 : vector<2x128xf32>
    %391 = math.exp %390 : vector<2x128xf32>
    %cst_62 = arith.constant 1.000000e+00 : f32
    %392 = vector.broadcast %cst_62 : f32 to vector<2x128xf32>
    %393 = arith.addf %392, %391 : vector<2x128xf32>
    %394 = arith.divf %392, %393 : vector<2x128xf32>
    %395 = arith.select %5, %389, %394 : vector<2x128xi1>, vector<2x128xf32>
    %396 = vector.extract_strided_slice %395 {offsets = [0, 0], sizes = [2, 32], strides = [1, 1]} : vector<2x128xf32> to vector<2x32xf32>
    %397 = vector.extract_strided_slice %395 {offsets = [0, 32], sizes = [2, 32], strides = [1, 1]} : vector<2x128xf32> to vector<2x32xf32>
    %398 = vector.extract_strided_slice %395 {offsets = [0, 64], sizes = [2, 32], strides = [1, 1]} : vector<2x128xf32> to vector<2x32xf32>
    %399 = vector.extract_strided_slice %395 {offsets = [0, 96], sizes = [2, 32], strides = [1, 1]} : vector<2x128xf32> to vector<2x32xf32>
    %400 = arith.mulf %397, %381 : vector<2x32xf32>
    %401 = arith.mulf %396, %398 : vector<2x32xf32>
    %402 = arith.addf %400, %401 : vector<2x32xf32>
    %403 = math.tanh %402 : vector<2x32xf32>
    %404 = arith.mulf %399, %403 : vector<2x32xf32>
    %405 = vector.extract_strided_slice %358 {offsets = [4, 0], sizes = [2, 128], strides = [1, 1]} : vector<16x128xf32> to vector<2x128xf32>
    %cst_63 = arith.constant dense<0.000000e+00> : vector<2x128xf32>
    %406 = tpu.matmul %404, %359, %cst_63 {dimension_numbers = #tpu.dot_dimension_numbers<[1], [0], [0], [1], [0, 0, 1, 1], [], []>} : vector<2x32xf32>, vector<32x128xf32>, vector<2x128xf32> -> vector<2x128xf32>
    %407 = arith.addf %405, %406 : vector<2x128xf32>
    %408 = vector.broadcast %360 : vector<1x128xf32> to vector<2x128xf32>
    %409 = arith.addf %407, %408 : vector<2x128xf32>
    %410 = math.tanh %409 : vector<2x128xf32>
    %411 = arith.negf %409 : vector<2x128xf32>
    %412 = math.exp %411 : vector<2x128xf32>
    %cst_64 = arith.constant 1.000000e+00 : f32
    %413 = vector.broadcast %cst_64 : f32 to vector<2x128xf32>
    %414 = arith.addf %413, %412 : vector<2x128xf32>
    %415 = arith.divf %413, %414 : vector<2x128xf32>
    %416 = arith.select %5, %410, %415 : vector<2x128xi1>, vector<2x128xf32>
    %417 = vector.extract_strided_slice %416 {offsets = [0, 0], sizes = [2, 32], strides = [1, 1]} : vector<2x128xf32> to vector<2x32xf32>
    %418 = vector.extract_strided_slice %416 {offsets = [0, 32], sizes = [2, 32], strides = [1, 1]} : vector<2x128xf32> to vector<2x32xf32>
    %419 = vector.extract_strided_slice %416 {offsets = [0, 64], sizes = [2, 32], strides = [1, 1]} : vector<2x128xf32> to vector<2x32xf32>
    %420 = vector.extract_strided_slice %416 {offsets = [0, 96], sizes = [2, 32], strides = [1, 1]} : vector<2x128xf32> to vector<2x32xf32>
    %421 = arith.mulf %418, %402 : vector<2x32xf32>
    %422 = arith.mulf %417, %419 : vector<2x32xf32>
    %423 = arith.addf %421, %422 : vector<2x32xf32>
    %424 = math.tanh %423 : vector<2x32xf32>
    %425 = arith.mulf %420, %424 : vector<2x32xf32>
    %426 = vector.extract_strided_slice %358 {offsets = [6, 0], sizes = [2, 128], strides = [1, 1]} : vector<16x128xf32> to vector<2x128xf32>
    %cst_65 = arith.constant dense<0.000000e+00> : vector<2x128xf32>
    %427 = tpu.matmul %425, %359, %cst_65 {dimension_numbers = #tpu.dot_dimension_numbers<[1], [0], [0], [1], [0, 0, 1, 1], [], []>} : vector<2x32xf32>, vector<32x128xf32>, vector<2x128xf32> -> vector<2x128xf32>
    %428 = arith.addf %426, %427 : vector<2x128xf32>
    %429 = vector.broadcast %360 : vector<1x128xf32> to vector<2x128xf32>
    %430 = arith.addf %428, %429 : vector<2x128xf32>
    %431 = math.tanh %430 : vector<2x128xf32>
    %432 = arith.negf %430 : vector<2x128xf32>
    %433 = math.exp %432 : vector<2x128xf32>
    %cst_66 = arith.constant 1.000000e+00 : f32
    %434 = vector.broadcast %cst_66 : f32 to vector<2x128xf32>
    %435 = arith.addf %434, %433 : vector<2x128xf32>
    %436 = arith.divf %434, %435 : vector<2x128xf32>
    %437 = arith.select %5, %431, %436 : vector<2x128xi1>, vector<2x128xf32>
    %438 = vector.extract_strided_slice %437 {offsets = [0, 0], sizes = [2, 32], strides = [1, 1]} : vector<2x128xf32> to vector<2x32xf32>
    %439 = vector.extract_strided_slice %437 {offsets = [0, 32], sizes = [2, 32], strides = [1, 1]} : vector<2x128xf32> to vector<2x32xf32>
    %440 = vector.extract_strided_slice %437 {offsets = [0, 64], sizes = [2, 32], strides = [1, 1]} : vector<2x128xf32> to vector<2x32xf32>
    %441 = vector.extract_strided_slice %437 {offsets = [0, 96], sizes = [2, 32], strides = [1, 1]} : vector<2x128xf32> to vector<2x32xf32>
    %442 = arith.mulf %439, %423 : vector<2x32xf32>
    %443 = arith.mulf %438, %440 : vector<2x32xf32>
    %444 = arith.addf %442, %443 : vector<2x32xf32>
    %445 = math.tanh %444 : vector<2x32xf32>
    %446 = arith.mulf %441, %445 : vector<2x32xf32>
    %447 = vector.extract_strided_slice %358 {offsets = [8, 0], sizes = [2, 128], strides = [1, 1]} : vector<16x128xf32> to vector<2x128xf32>
    %cst_67 = arith.constant dense<0.000000e+00> : vector<2x128xf32>
    %448 = tpu.matmul %446, %359, %cst_67 {dimension_numbers = #tpu.dot_dimension_numbers<[1], [0], [0], [1], [0, 0, 1, 1], [], []>} : vector<2x32xf32>, vector<32x128xf32>, vector<2x128xf32> -> vector<2x128xf32>
    %449 = arith.addf %447, %448 : vector<2x128xf32>
    %450 = vector.broadcast %360 : vector<1x128xf32> to vector<2x128xf32>
    %451 = arith.addf %449, %450 : vector<2x128xf32>
    %452 = math.tanh %451 : vector<2x128xf32>
    %453 = arith.negf %451 : vector<2x128xf32>
    %454 = math.exp %453 : vector<2x128xf32>
    %cst_68 = arith.constant 1.000000e+00 : f32
    %455 = vector.broadcast %cst_68 : f32 to vector<2x128xf32>
    %456 = arith.addf %455, %454 : vector<2x128xf32>
    %457 = arith.divf %455, %456 : vector<2x128xf32>
    %458 = arith.select %5, %452, %457 : vector<2x128xi1>, vector<2x128xf32>
    %459 = vector.extract_strided_slice %458 {offsets = [0, 0], sizes = [2, 32], strides = [1, 1]} : vector<2x128xf32> to vector<2x32xf32>
    %460 = vector.extract_strided_slice %458 {offsets = [0, 32], sizes = [2, 32], strides = [1, 1]} : vector<2x128xf32> to vector<2x32xf32>
    %461 = vector.extract_strided_slice %458 {offsets = [0, 64], sizes = [2, 32], strides = [1, 1]} : vector<2x128xf32> to vector<2x32xf32>
    %462 = vector.extract_strided_slice %458 {offsets = [0, 96], sizes = [2, 32], strides = [1, 1]} : vector<2x128xf32> to vector<2x32xf32>
    %463 = arith.mulf %460, %444 : vector<2x32xf32>
    %464 = arith.mulf %459, %461 : vector<2x32xf32>
    %465 = arith.addf %463, %464 : vector<2x32xf32>
    %466 = math.tanh %465 : vector<2x32xf32>
    %467 = arith.mulf %462, %466 : vector<2x32xf32>
    %468 = vector.extract_strided_slice %358 {offsets = [10, 0], sizes = [2, 128], strides = [1, 1]} : vector<16x128xf32> to vector<2x128xf32>
    %cst_69 = arith.constant dense<0.000000e+00> : vector<2x128xf32>
    %469 = tpu.matmul %467, %359, %cst_69 {dimension_numbers = #tpu.dot_dimension_numbers<[1], [0], [0], [1], [0, 0, 1, 1], [], []>} : vector<2x32xf32>, vector<32x128xf32>, vector<2x128xf32> -> vector<2x128xf32>
    %470 = arith.addf %468, %469 : vector<2x128xf32>
    %471 = vector.broadcast %360 : vector<1x128xf32> to vector<2x128xf32>
    %472 = arith.addf %470, %471 : vector<2x128xf32>
    %473 = math.tanh %472 : vector<2x128xf32>
    %474 = arith.negf %472 : vector<2x128xf32>
    %475 = math.exp %474 : vector<2x128xf32>
    %cst_70 = arith.constant 1.000000e+00 : f32
    %476 = vector.broadcast %cst_70 : f32 to vector<2x128xf32>
    %477 = arith.addf %476, %475 : vector<2x128xf32>
    %478 = arith.divf %476, %477 : vector<2x128xf32>
    %479 = arith.select %5, %473, %478 : vector<2x128xi1>, vector<2x128xf32>
    %480 = vector.extract_strided_slice %479 {offsets = [0, 0], sizes = [2, 32], strides = [1, 1]} : vector<2x128xf32> to vector<2x32xf32>
    %481 = vector.extract_strided_slice %479 {offsets = [0, 32], sizes = [2, 32], strides = [1, 1]} : vector<2x128xf32> to vector<2x32xf32>
    %482 = vector.extract_strided_slice %479 {offsets = [0, 64], sizes = [2, 32], strides = [1, 1]} : vector<2x128xf32> to vector<2x32xf32>
    %483 = vector.extract_strided_slice %479 {offsets = [0, 96], sizes = [2, 32], strides = [1, 1]} : vector<2x128xf32> to vector<2x32xf32>
    %484 = arith.mulf %481, %465 : vector<2x32xf32>
    %485 = arith.mulf %480, %482 : vector<2x32xf32>
    %486 = arith.addf %484, %485 : vector<2x32xf32>
    %487 = math.tanh %486 : vector<2x32xf32>
    %488 = arith.mulf %483, %487 : vector<2x32xf32>
    %489 = vector.extract_strided_slice %358 {offsets = [12, 0], sizes = [2, 128], strides = [1, 1]} : vector<16x128xf32> to vector<2x128xf32>
    %cst_71 = arith.constant dense<0.000000e+00> : vector<2x128xf32>
    %490 = tpu.matmul %488, %359, %cst_71 {dimension_numbers = #tpu.dot_dimension_numbers<[1], [0], [0], [1], [0, 0, 1, 1], [], []>} : vector<2x32xf32>, vector<32x128xf32>, vector<2x128xf32> -> vector<2x128xf32>
    %491 = arith.addf %489, %490 : vector<2x128xf32>
    %492 = vector.broadcast %360 : vector<1x128xf32> to vector<2x128xf32>
    %493 = arith.addf %491, %492 : vector<2x128xf32>
    %494 = math.tanh %493 : vector<2x128xf32>
    %495 = arith.negf %493 : vector<2x128xf32>
    %496 = math.exp %495 : vector<2x128xf32>
    %cst_72 = arith.constant 1.000000e+00 : f32
    %497 = vector.broadcast %cst_72 : f32 to vector<2x128xf32>
    %498 = arith.addf %497, %496 : vector<2x128xf32>
    %499 = arith.divf %497, %498 : vector<2x128xf32>
    %500 = arith.select %5, %494, %499 : vector<2x128xi1>, vector<2x128xf32>
    %501 = vector.extract_strided_slice %500 {offsets = [0, 0], sizes = [2, 32], strides = [1, 1]} : vector<2x128xf32> to vector<2x32xf32>
    %502 = vector.extract_strided_slice %500 {offsets = [0, 32], sizes = [2, 32], strides = [1, 1]} : vector<2x128xf32> to vector<2x32xf32>
    %503 = vector.extract_strided_slice %500 {offsets = [0, 64], sizes = [2, 32], strides = [1, 1]} : vector<2x128xf32> to vector<2x32xf32>
    %504 = vector.extract_strided_slice %500 {offsets = [0, 96], sizes = [2, 32], strides = [1, 1]} : vector<2x128xf32> to vector<2x32xf32>
    %505 = arith.mulf %502, %486 : vector<2x32xf32>
    %506 = arith.mulf %501, %503 : vector<2x32xf32>
    %507 = arith.addf %505, %506 : vector<2x32xf32>
    %508 = math.tanh %507 : vector<2x32xf32>
    %509 = arith.mulf %504, %508 : vector<2x32xf32>
    %510 = vector.extract_strided_slice %358 {offsets = [14, 0], sizes = [2, 128], strides = [1, 1]} : vector<16x128xf32> to vector<2x128xf32>
    %cst_73 = arith.constant dense<0.000000e+00> : vector<2x128xf32>
    %511 = tpu.matmul %509, %359, %cst_73 {dimension_numbers = #tpu.dot_dimension_numbers<[1], [0], [0], [1], [0, 0, 1, 1], [], []>} : vector<2x32xf32>, vector<32x128xf32>, vector<2x128xf32> -> vector<2x128xf32>
    %512 = arith.addf %510, %511 : vector<2x128xf32>
    %513 = vector.broadcast %360 : vector<1x128xf32> to vector<2x128xf32>
    %514 = arith.addf %512, %513 : vector<2x128xf32>
    %515 = math.tanh %514 : vector<2x128xf32>
    %516 = arith.negf %514 : vector<2x128xf32>
    %517 = math.exp %516 : vector<2x128xf32>
    %cst_74 = arith.constant 1.000000e+00 : f32
    %518 = vector.broadcast %cst_74 : f32 to vector<2x128xf32>
    %519 = arith.addf %518, %517 : vector<2x128xf32>
    %520 = arith.divf %518, %519 : vector<2x128xf32>
    %521 = arith.select %5, %515, %520 : vector<2x128xi1>, vector<2x128xf32>
    %522 = vector.extract_strided_slice %521 {offsets = [0, 0], sizes = [2, 32], strides = [1, 1]} : vector<2x128xf32> to vector<2x32xf32>
    %523 = vector.extract_strided_slice %521 {offsets = [0, 32], sizes = [2, 32], strides = [1, 1]} : vector<2x128xf32> to vector<2x32xf32>
    %524 = vector.extract_strided_slice %521 {offsets = [0, 64], sizes = [2, 32], strides = [1, 1]} : vector<2x128xf32> to vector<2x32xf32>
    %525 = vector.extract_strided_slice %521 {offsets = [0, 96], sizes = [2, 32], strides = [1, 1]} : vector<2x128xf32> to vector<2x32xf32>
    %526 = arith.mulf %523, %507 : vector<2x32xf32>
    %527 = arith.mulf %522, %524 : vector<2x32xf32>
    %528 = arith.addf %526, %527 : vector<2x32xf32>
    %529 = math.tanh %528 : vector<2x32xf32>
    %530 = arith.mulf %525, %529 : vector<2x32xf32>
    %c0_75 = arith.constant 0 : index
    %c0_76 = arith.constant 0 : index
    %531 = vector.load %arg10[%c0_75, %c0_76] : memref<32x9xf32, #tpu.memory_space<vmem>>, vector<32x9xf32>
    %cst_77 = arith.constant dense<0.000000e+00> : vector<2x9xf32>
    %532 = tpu.matmul %530, %531, %cst_77 {dimension_numbers = #tpu.dot_dimension_numbers<[1], [0], [0], [1], [0, 0, 1, 1], [], []>} : vector<2x32xf32>, vector<32x9xf32>, vector<2x9xf32> -> vector<2x9xf32>
    %c0_78 = arith.constant 0 : index
    %c0_79 = arith.constant 0 : index
    %533 = vector.load %arg11[%c0_78, %c0_79] : memref<1x9xf32, #tpu.memory_space<vmem>>, vector<1x9xf32>
    %534 = vector.broadcast %533 : vector<1x9xf32> to vector<2x9xf32>
    %535 = arith.addf %532, %534 : vector<2x9xf32>
    %c0_80 = arith.constant 0 : index
    %c0_81 = arith.constant 0 : index
    %536 = vector.load %arg12[%c0_80, %c0_81] : memref<2x9xf32, #tpu.memory_space<vmem>>, vector<2x9xf32>
    tpu.vector_store %arg12[%c0_80, %c0_81], %535 {strides = array<i32>} : memref<2x9xf32, #tpu.memory_space<vmem>>, vector<2x9xf32>,
    return
  }
}

</mosaic_0001>

<bundles_post_ra>
// kernel: rnn_forward.1
= control target key start
LH: loop header
LB: loop body
LE: loop exit
PB: predicated region body
PF: predicated region fallthrough
CT: control target
= control target key end

     0   :  { %17 = vsyncpa [#allocation3], 0  ;;  %s4646_s0 = inlined_call_operand.vmem [shape: f32[16,9], index: 0, kind: input, shape index: {}]   ;;  %s4647_s1 = inlined_call_operand.hbm [shape: f32[9,128], index: 1, kind: input, shape index: {}]   ;;  %s4648_s2 = inlined_call_operand.vmem [shape: f32[32,128], index: 2, kind: input, shape index: {}]   ;;  %s4649_s3 = inlined_call_operand.hbm [shape: f32[1,128], index: 3, kind: input, shape index: {}]   ;;  %s4650_s4 = inlined_call_operand.vmem [shape: f32[32,128], index: 4, kind: input, shape index: {}]   ;;  %s4651_s5 = inlined_call_operand.vmem [shape: f32[32,128], index: 5, kind: input, shape index: {}]   ;;  %s4652_s6 = inlined_call_operand.vmem [shape: f32[1,128], index: 6, kind: input, shape index: {}]   ;;  %s4653_s7 = inlined_call_operand.hbm [shape: f32[32,128], index: 7, kind: input, shape index: {}]   ;;  %s4654_s8 = inlined_call_operand.hbm [shape: f32[32,128], index: 8, kind: input, shape index: {}]   ;;  %s4655_s9 = inlined_call_operand.vmem [shape: f32[1,128], index: 9, kind: input, shape index: {}]   ;;  %s4656_s10 = inlined_call_operand.vmem [shape: f32[32,9], index: 10, kind: input, shape index: {}]   ;;  %s4657_s11 = inlined_call_operand.hbm [shape: f32[1,9], index: 11, kind: input, shape index: {}]   ;;  %s4658_s12 = inlined_call_operand.hbm [shape: f32[2,9], index: 12, kind: output, shape index: {}]  }
   0x1   :  { %18 = vsyncpa [#allocation6], 0 }
   0x2   :  { %19 = vsyncpa [#allocation9], 0 }
   0x3   :  { %20 = vsyncpa [#allocation4], 0  ;;  %s3936_s21 = smov [#allocation5]  }
   0x4   :  { %s43_s22 = sshll.u32 %s3936_s21, 4  ;;  %s44_s22 = int_to_ptr.vmem [resolvable:$true] %s43_s22 }
   0x5   :  { %s3816_s23 = scalar_lea.vmem %s44_s22, 16  ;;  %s3820_s24 = scalar_lea.vmem %s44_s22, 32 }
   0x6   :  { %p3817_p0 = scmp.ne.s32.totalorder %s44_s22, %s3816_s23  ;;  %p3821_p1 = scmp.lt.s32.totalorder %s44_s22, %s44_s22 }
   0x7   :  { %p3822_p2 = scmp.lt.s32.totalorder %s3820_s24, %s3816_s23 }
   0x9   :  { %p3823_p3 = por %p3822_p2, %p3821_p1 }
   0xb   :  { %p3824_p4 = pnand %p3823_p3, %p3817_p0 }
   0xd   :  { %3827 = shalt.err (!%p3824_p4)
}
   0xe   :  { %46 = dma.hbm_to_vmem [thread:$0]  %s4649_s3, 16, %s44_s22, [#allocation6]  }
   0xf   :  { %s3937_s27 = smov [#allocation8]   ;;  %s3938_s29 = smov [#allocation2]  }
  0x10   :  { %s70_s28 = sshll.u32 %s3937_s27, 4  ;;  %s28_s30 = sshll.u32 %s3938_s29, 4  ;;  %s71_s28 = int_to_ptr.vmem [resolvable:$true] %s70_s28  ;;  %s29_s30 = int_to_ptr.vmem [resolvable:$true] %s28_s30 }
  0x11   :  { %s3836_s13 = scalar_lea.vmem %s71_s28, 512  ;;  %p3841_p6 = scmp.lt.s32.totalorder %s71_s28, %s71_s28 }
  0x12   :  { %p3837_p5 = scmp.ne.s32.totalorder %s71_s28, %s3836_s13  ;;  %p3842_p7 = scmp.lt.s32.totalorder %s3836_s13, %s3836_s13 }
  0x14   :  { %p3843_p8 = por %p3842_p7, %p3841_p6 }
  0x16   :  { %p3844_p9 = pnand %p3843_p8, %p3837_p5 }
  0x18   :  { %3847 = shalt.err (!%p3844_p9)
}
  0x19   :  { %s3939_s14 = smov 128   ;;  %s3940_s15 = smov 8  }
  0x1a   :  { %76 = dma.hbm_to_vmem [thread:$0]  %s4654_s8, 512, %s71_s28, [#allocation9], %s3939_s14, %s3939_s14, %s3940_s15  }
  0x1b   :  { %s3856_s3 = scalar_lea.vmem %s29_s30, 256  ;;  %p3861_p11 = scmp.lt.s32.totalorder %s29_s30, %s29_s30 }
  0x1c   :  { %p3857_p10 = scmp.ne.s32.totalorder %s29_s30, %s3856_s3  ;;  %p3862_p12 = scmp.lt.s32.totalorder %s3856_s3, %s3856_s3 }
  0x1e   :  { %p3863_p13 = por %p3862_p12, %p3861_p11 }
  0x20   :  { %p3864_p0 = pnand %p3863_p13, %p3857_p10 }
  0x22   :  { %3867 = shalt.err (!%p3864_p0)
}
  0x23   :  { %34 = dma.hbm_to_vmem [thread:$0]  %s4647_s1, 256, %s29_s30, [#allocation3], %s3939_s14, %s3939_s14, %s3940_s15  }
  0x24   :  { %s3941_s20 = smov [#allocation7]   ;;  %s3942_s22 = smov [#allocation10]  }
  0x25   :  { %s58_s21 = sshll.u32 %s3941_s20, 4  ;;  %s87_s23 = sshll.u32 %s3942_s22, 4  ;;  %s59_s21 = int_to_ptr.vmem [resolvable:$true] %s58_s21  ;;  %s88_s23 = int_to_ptr.vmem [resolvable:$true] %s87_s23 }
  0x26   :  { %s3876_s24 = scalar_lea.vmem %s59_s21, 512  ;;  %p3881_p2 = scmp.lt.s32.totalorder %s59_s21, %s59_s21 }
  0x27   :  { %p3877_p1 = scmp.ne.s32.totalorder %s59_s21, %s3876_s24  ;;  %p3882_p3 = scmp.lt.s32.totalorder %s3876_s24, %s3876_s24 }
  0x29   :  { %p3883_p4 = por %p3882_p3, %p3881_p2 }
  0x2b   :  { %p3884_p5 = pnand %p3883_p4, %p3877_p1 }
  0x2d   :  { %3887 = shalt.err (!%p3884_p5)
}
  0x2e   :  { %64 = dma.hbm_to_vmem [thread:$0]  %s4653_s7, 512, %s59_s21, [#allocation6], %s3939_s14, %s3939_s14, %s3940_s15  }
  0x2f   :  { %s3896_s26 = scalar_lea.vmem %s88_s23, 16  ;;  %s3900_s1 = scalar_lea.vmem %s88_s23, 32 }
  0x30   :  { %p3897_p6 = scmp.ne.s32.totalorder %s88_s23, %s3896_s26  ;;  %p3901_p7 = scmp.lt.s32.totalorder %s88_s23, %s88_s23 }
  0x31   :  { %p3902_p8 = scmp.lt.s32.totalorder %s3900_s1, %s3896_s26 }
  0x33   :  { %p3903_p9 = por %p3902_p8, %p3901_p7 }
  0x35   :  { %p3904_p10 = pnand %p3903_p9, %p3897_p6 }
  0x37   :  { %3907 = shalt.err (!%p3904_p10)
}
  0x38   :  { %90 = dma.hbm_to_vmem [thread:$0]  %s4657_s11, 16, %s88_s23, [#allocation9]  }
  0x39   :  { %3928 = dma.done.wait [#allocation3], 256  }
  0x3a   :  { %3929 = vsyncadd [#allocation3], 4294967040 }
  0x3b   :  { %3930 = dma.done.wait [#allocation6], 528  }
  0x3c   :  { %3931 = vsyncadd [#allocation6], 4294966768 }
  0x3d   :  { %3932 = dma.done.wait [#allocation9], 528  }
  0x3e   :  { %3933 = vsyncadd [#allocation9], 4294966768  ;;  %v3943_v0 = vmov 0.0   ;;  %vm3944_vm0 = vmmov 0   ;;  %vm122_vm1 = vcmask 1040384   ;;  %v4034_v2 = vld [vmem:[%s4648_s2 + $0x18] sm:$0xff]  ;;  %v106_v19 = vlaneseq }
  0x3f   :  { %3307 = vmatprep.subr.mxu1 %v3943_v0  ;;  %3315 = vmatprep.mubr.msk.f32.mxu1 %vm3944_vm0, %v3943_v0  ;;  %v114_v1 = vld [vmem:[#allocation2 + $0x8] sm:$0x1]  ;;  %v113_v3 = vld [vmem:[#allocation2] sm:$0xff]  ;;  %v4040_v4 = vld [vmem:[%s4648_s2 + $0x10] sm:$0xff]  ;;  %vm115_vm2 = vcmask 72704   ;;  %vm206_vm6 = vcmask 261120  }
  0x40   :  { %3300 = vmatprep.subr.msk.mxu0 %vm122_vm1, %v114_v1  ;;  %3308 = vmatpush3.msra.mxu1 %v4034_v2  ;;  %v111_v5 = vld [vmem:[%s4646_s0] sm:$0xff]  ;;  %v112_v6 = vld [vmem:[%s4646_s0 + $0x8] sm:$0xff]  ;;  %v4091_v11 = vld [vmem:[#allocation5] ss:$0 sm:$0xff]  ;;  %v107_v20 = vand.u32 127, %v106_v19  ;;  %s3945_s0 = smov 64  }
  0x41   :  { %3301 = vmatpush3.msk.msra.mxu0 %vm122_vm1, %v114_v1  ;;  %3309 = vmatprep.subr.mxu1 %v3943_v0  ;;  %v4053_v7 = vld [vmem:[%s4648_s2 + $0x8] sm:$0xff]  ;;  %v4059_v8 = vld [vmem:[%s4648_s2] sm:$0xff]  ;;  %s3946_s2 = smov 32   ;;  %vm1071_vm7 = vcmask 1041408   ;;  %vm1073_vm8 = vcmask 1043456   ;;  %vm1075_vm9 = vcmask 1045504  }
  0x42   :  { %3302 = vmatprep.subr.mxu0 %v113_v3  ;;  %3310 = vmatpush3.msra.mxu1 %v4040_v4  ;;  %vm108_vm3 = vcmp.ge.s32.totalorder %v107_v20, 64  ;;  %vm109_vm4 = vcmp.lt.s32.totalorder %v107_v20, 96  ;;  %v2998_v21 = vld [vmem:[%s4656_s10 + $0x10] sm:$0xff]  ;;  %s3947_s21 = smov [#allocation11]   ;;  %vm3083_vm10 = vcmask 66560  }
  0x43   :  { %3303 = vmatpush3.msra.mxu0 %v113_v3  ;;  %3304 = vmatprep.mubr.msk.f32.mxu0 %vm115_vm2, %v111_v5  ;;  %vm4095_vm5 = vmand %vm108_vm3, %vm109_vm4  ;;  %s3091_s22 = sshll.u32 %s3947_s21, 4  ;;  %s3092_s22 = int_to_ptr.vmem [resolvable:$true] %s3091_s22 }
  0x44   :  { %3311 = vmatprep.subr.mxu1 %v3943_v0  ;;  %3305 = vmatmul.mubr.msk.f32.vlgmr.msra.gmra.mxu0 %vm115_vm2, %v112_v6  ;;  %p3913_p12 = scmp.lt.s32.totalorder %s3092_s22, %s3092_s22 }
  0x45   :  { %3312 = vmatpush3.msra.mxu1 %v4053_v7  ;;  %3318 = vmatprep.subr.mxu0 %v3943_v0 }
  0x46   :  { %3313 = vmatprep.subr.mxu1 %v3943_v0  ;;  %3319 = vmatpush3.msra.mxu0 %v4034_v2 }
  0x47   :  { %3314 = vmatpush3.msra.mxu1 %v4059_v8  ;;  %3320 = vmatprep.subr.mxu0 %v3943_v0 }
  0x48   :  { %3316 = vmatmul.mubr.f32.vlgmr.msra.gmra.mxu1 %v3943_v0  ;;  %3321 = vmatpush3.msra.mxu0 %v4040_v4 }
  0x49   :  { %3322 = vmatprep.subr.mxu0 %v3943_v0  ;;  %3326 = vmatprep.mubr.msk.f32.mxu0 %vm3944_vm0, %v3943_v0 }
  0x4a   :  { %3323 = vmatpush3.msra.mxu0 %v4053_v7  ;;  %3329 = vmatprep.subr.mxu1 %v3943_v0 }
  0x4b   :  { %3324 = vmatprep.subr.mxu0 %v3943_v0  ;;  %3330 = vmatpush3.msra.mxu1 %v4034_v2 }
  0x4c   :  { %3325 = vmatpush3.msra.mxu0 %v4059_v8  ;;  %3331 = vmatprep.subr.mxu1 %v3943_v0 }
  0x4d   :  { %3332 = vmatpush3.msra.mxu1 %v4040_v4  ;;  %3337 = vmatprep.mubr.msk.f32.mxu1 %vm3944_vm0, %v3943_v0 }
  0x4e   :  { %3333 = vmatprep.subr.mxu1 %v3943_v0  ;;  %3340 = vmatprep.subr.mxu0 %v3943_v0 }
  0x4f   :  { %3334 = vmatpush3.msra.mxu1 %v4053_v7 }
  0x50   :  { %3335 = vmatprep.subr.mxu1 %v3943_v0 }
  0x51   :  { %3336 = vmatpush3.msra.mxu1 %v4059_v8 }
  0x52   :  { %3351 = vmatprep.subr.mxu1 %v3943_v0 }
 0x104   :  { %v4087_v9 = vpop.f32.mrf.mxu0 }
 0x106   :  { %v4089_v10 = vpop.f32.mrf.mxu0 }
 0x108   :  { %v276_v12 = vpop.f32.mrf.mxu1 }
 0x109   :  { %v280_v13 = vadd.f32 %v276_v12, %v4089_v10 }
 0x10a   :  { %v3317_v14 = vpop.f32.mrf.mxu1 }
 0x10b   :  { %v287_v15 = vadd.f32 %v4091_v11, %v280_v13 }
 0x10d   :  { %v3106_v16 = vmul.f32 -1.442695, %v287_v15 }
 0x10f   :  { %3616 = vpow2.f32 %v3106_v16 }
 0x110   :  { %3618 = vtanh.f32 %v287_v15 }
 0x11c   :  { %v3617_v17 = vpop.eup %3616 }
 0x11d   :  { %v292_v18 = vadd.f32 1.0, %v3617_v17  ;;  %v3619_v22 = vpop.eup %3618 }
 0x11f   :  { %3620 = vrcp.f32 %v292_v18 }
 0x12c   :  { %v3621_v23 = vpop.eup %3620 }
 0x12d   :  { %v295_v24 = vsel %vm4095_vm5, %v3619_v22, %v3621_v23 }
 0x12e   :  { %298 = vrot.lane.b32.xlu0 %v295_v24, %s3945_s0  ;;  %v296_v27 = vmul.f32 0.0, %v295_v24 }
 0x1a0   :  { %v299_v25 = vpop.permute.xlu0 %298 }
 0x1a1   :  { %v301_v26 = vmul.f32 %v299_v25, %v295_v24 }
 0x1a3   :  { %303 = vrot.lane.b32.xlu0 %v301_v26, %s3946_s2 }
 0x215   :  { %v304_v28 = vpop.permute.xlu0 %303 }
 0x216   :  { %v306_v29 = vadd.f32 %v304_v28, %v296_v27 }
 0x218   :  { %3622 = vtanh.f32 %v306_v29  ;;  %v402_v47 = vrot.slane %v306_v29, 6 }
 0x225   :  { %v3623_v30 = vpop.eup %3622 }
 0x226   :  { %309 = vrot.lane.b32.xlu1 %v3623_v30, %s3945_s0 }
 0x298   :  { %v310_v31 = vpop.permute.xlu1 %309 }
 0x299   :  { %v4104_v32 = vmul.f32 %v310_v31, %v295_v24 }
 0x29b   :  { %314 = vrot.lane.b32.xlu1 %v4104_v32, %s3946_s2 }
 0x30d   :  { %v315_v33 = vpop.permute.xlu1 %314 }
 0x30e   :  { %3327 = vmatmul.mubr.msk.f32.vlgmr.msra.gmra.mxu0 %vm206_vm6, %v315_v33 }
 0x30f   :  { %3341 = vmatpush3.msra.mxu0 %v4034_v2  ;;  %3348 = vmatprep.mubr.msk.f32.mxu0 %vm3944_vm0, %v3943_v0 }
 0x310   :  { %3342 = vmatprep.subr.mxu0 %v3943_v0 }
 0x311   :  { %3343 = vmatpush3.msra.mxu0 %v4040_v4 }
 0x312   :  { %3344 = vmatprep.subr.mxu0 %v3943_v0 }
 0x313   :  { %3345 = vmatpush3.msra.mxu0 %v4053_v7 }
 0x314   :  { %3346 = vmatprep.subr.mxu0 %v3943_v0 }
 0x315   :  { %3347 = vmatpush3.msra.mxu0 %v4059_v8 }
 0x316   :  { %3362 = vmatprep.subr.mxu0 %v3943_v0 }
 0x3ce   :  { %v384_v34 = vpop.f32.mrf.mxu0 }
 0x3cf   :  { %v389_v35 = vrot.slane %v384_v34, 6 }
 0x3d0   :  { %v3328_v36 = vpop.f32.mrf.mxu0 }
 0x3d1   :  { %v391_v37 = vadd.f32 %v389_v35, %v4089_v10 }
 0x3d3   :  { %v392_v38 = vadd.f32 %v4091_v11, %v391_v37 }
 0x3d5   :  { %v3108_v39 = vmul.f32 -1.442695, %v392_v38 }
 0x3d7   :  { %3624 = vpow2.f32 %v3108_v39 }
 0x3d8   :  { %3626 = vtanh.f32 %v392_v38 }
 0x3e4   :  { %v3625_v40 = vpop.eup %3624 }
 0x3e5   :  { %v397_v41 = vadd.f32 1.0, %v3625_v40  ;;  %v3627_v42 = vpop.eup %3626 }
 0x3e7   :  { %3628 = vrcp.f32 %v397_v41 }
 0x3f4   :  { %v3629_v43 = vpop.eup %3628 }
 0x3f5   :  { %v400_v44 = vsel %vm4095_vm5, %v3627_v42, %v3629_v43 }
 0x3f6   :  { %406 = vrot.lane.b32.xlu0 %v400_v44, %s3945_s0  ;;  %v404_v48 = vmul.f32 %v402_v47, %v400_v44 }
 0x468   :  { %v407_v45 = vpop.permute.xlu0 %406 }
 0x469   :  { %v409_v46 = vmul.f32 %v407_v45, %v400_v44 }
 0x46b   :  { %411 = vrot.lane.b32.xlu1 %v409_v46, %s3946_s2 }
 0x4dd   :  { %v412_v49 = vpop.permute.xlu1 %411 }
 0x4de   :  { %v414_v50 = vadd.f32 %v412_v49, %v404_v48 }
 0x4e0   :  { %3630 = vtanh.f32 %v414_v50  ;;  %v511_v13 = vrot.slane %v414_v50, 6 }
 0x4ed   :  { %v3631_v51 = vpop.eup %3630 }
 0x4ee   :  { %417 = vrot.lane.b32.xlu0 %v3631_v51, %s3945_s0 }
 0x560   :  { %v418_v52 = vpop.permute.xlu0 %417 }
 0x561   :  { %v420_v53 = vmul.f32 %v418_v52, %v400_v44 }
 0x563   :  { %v422_v54 = vrot.slane %v420_v53, 2  ;;  %v1072_v20 = vsel %vm1071_vm7, %v4104_v32, %v420_v53 }
 0x565   :  { %423 = vrot.lane.b32.xlu1 %v422_v54, %s3946_s2 }
 0x5d7   :  { %v424_v55 = vpop.permute.xlu1 %423 }
 0x5d8   :  { %3338 = vmatmul.mubr.msk.f32.vlgmr.msra.gmra.mxu1 %vm206_vm6, %v424_v55 }
 0x5d9   :  { %3352 = vmatpush3.msra.mxu1 %v4034_v2  ;;  %3359 = vmatprep.mubr.msk.f32.mxu1 %vm3944_vm0, %v3943_v0 }
 0x5da   :  { %3353 = vmatprep.subr.mxu1 %v3943_v0 }
 0x5db   :  { %3354 = vmatpush3.msra.mxu1 %v4040_v4 }
 0x5dc   :  { %3355 = vmatprep.subr.mxu1 %v3943_v0 }
 0x5dd   :  { %3356 = vmatpush3.msra.mxu1 %v4053_v7 }
 0x5de   :  { %3357 = vmatprep.subr.mxu1 %v3943_v0 }
 0x5df   :  { %3358 = vmatpush3.msra.mxu1 %v4059_v8 }
 0x5e0   :  { %3373 = vmatprep.subr.mxu1 %v3943_v0 }
 0x698   :  { %v493_v56 = vpop.f32.mrf.mxu1 }
 0x699   :  { %v498_v57 = vrot.slane %v493_v56, 4 }
 0x69a   :  { %v3339_v58 = vpop.f32.mrf.mxu1 }
 0x69b   :  { %v500_v59 = vadd.f32 %v498_v57, %v4089_v10 }
 0x69d   :  { %v501_v60 = vadd.f32 %v4091_v11, %v500_v59 }
 0x69f   :  { %v3110_v61 = vmul.f32 -1.442695, %v501_v60 }
 0x6a1   :  { %3632 = vpow2.f32 %v3110_v61 }
 0x6a2   :  { %3634 = vtanh.f32 %v501_v60 }
 0x6ae   :  { %v3633_v62 = vpop.eup %3632 }
 0x6af   :  { %v506_v63 = vadd.f32 1.0, %v3633_v62  ;;  %v3635_v1 = vpop.eup %3634 }
 0x6b1   :  { %3636 = vrcp.f32 %v506_v63 }
 0x6be   :  { %v3637_v3 = vpop.eup %3636 }
 0x6bf   :  { %v509_v5 = vsel %vm4095_vm5, %v3635_v1, %v3637_v3 }
 0x6c0   :  { %515 = vrot.lane.b32.xlu0 %v509_v5, %s3945_s0  ;;  %v513_v14 = vmul.f32 %v511_v13, %v509_v5 }
 0x732   :  { %v516_v6 = vpop.permute.xlu0 %515 }
 0x733   :  { %v518_v12 = vmul.f32 %v516_v6, %v509_v5 }
 0x735   :  { %520 = vrot.lane.b32.xlu1 %v518_v12, %s3946_s2 }
 0x7a7   :  { %v521_v15 = vpop.permute.xlu1 %520 }
 0x7a8   :  { %v523_v16 = vadd.f32 %v521_v15, %v513_v14 }
 0x7aa   :  { %3638 = vtanh.f32 %v523_v16 }
 0x7b7   :  { %v3639_v17 = vpop.eup %3638 }
 0x7b8   :  { %526 = vrot.lane.b32.xlu0 %v3639_v17, %s3945_s0 }
 0x82a   :  { %v527_v18 = vpop.permute.xlu0 %526 }
 0x82b   :  { %v529_v19 = vmul.f32 %v527_v18, %v509_v5 }
 0x82d   :  { %v531_v22 = vrot.slane %v529_v19, 4  ;;  %v1074_v23 = vsel %vm1073_vm8, %v1072_v20, %v529_v19 }
 0x82f   :  { %532 = vrot.lane.b32.xlu1 %v531_v22, %s3946_s2 }
 0x8a1   :  { %v533_v24 = vpop.permute.xlu1 %532 }
 0x8a2   :  { %3349 = vmatmul.mubr.msk.f32.vlgmr.msra.gmra.mxu0 %vm206_vm6, %v533_v24 }
 0x8a3   :  { %3363 = vmatpush3.msra.mxu0 %v4034_v2  ;;  %3370 = vmatprep.mubr.msk.f32.mxu0 %vm3944_vm0, %v3943_v0 }
 0x8a4   :  { %3364 = vmatprep.subr.mxu0 %v3943_v0 }
 0x8a5   :  { %3365 = vmatpush3.msra.mxu0 %v4040_v4 }
 0x8a6   :  { %3366 = vmatprep.subr.mxu0 %v3943_v0 }
 0x8a7   :  { %3367 = vmatpush3.msra.mxu0 %v4053_v7 }
 0x8a8   :  { %3368 = vmatprep.subr.mxu0 %v3943_v0 }
 0x8a9   :  { %3369 = vmatpush3.msra.mxu0 %v4059_v8 }
 0x8aa   :  { %3384 = vmatprep.subr.mxu0 %v3943_v0 }
 0x962   :  { %v602_v25 = vpop.f32.mrf.mxu0 }
 0x963   :  { %v607_v26 = vrot.slane %v602_v25, 2 }
 0x964   :  { %v3350_v27 = vpop.f32.mrf.mxu0 }
 0x965   :  { %v609_v28 = vadd.f32 %v607_v26, %v4089_v10  ;;  %v620_v10 = vrot.slane %v523_v16, 6 }
 0x967   :  { %v610_v29 = vadd.f32 %v4091_v11, %v609_v28 }
 0x969   :  { %v3112_v30 = vmul.f32 -1.442695, %v610_v29 }
 0x96b   :  { %3640 = vpow2.f32 %v3112_v30 }
 0x96c   :  { %3642 = vtanh.f32 %v610_v29 }
 0x978   :  { %v3641_v31 = vpop.eup %3640 }
 0x979   :  { %v615_v32 = vadd.f32 1.0, %v3641_v31  ;;  %v3643_v33 = vpop.eup %3642 }
 0x97b   :  { %3644 = vrcp.f32 %v615_v32 }
 0x988   :  { %v3645_v34 = vpop.eup %3644 }
 0x989   :  { %v618_v35 = vsel %vm4095_vm5, %v3643_v33, %v3645_v34 }
 0x98a   :  { %624 = vrot.lane.b32.xlu0 %v618_v35, %s3945_s0  ;;  %v622_v38 = vmul.f32 %v620_v10, %v618_v35 }
 0x9fc   :  { %v625_v36 = vpop.permute.xlu0 %624 }
 0x9fd   :  { %v627_v37 = vmul.f32 %v625_v36, %v618_v35 }
 0x9ff   :  { %629 = vrot.lane.b32.xlu1 %v627_v37, %s3946_s2 }
 0xa71   :  { %v630_v39 = vpop.permute.xlu1 %629 }
 0xa72   :  { %v632_v40 = vadd.f32 %v630_v39, %v622_v38 }
 0xa74   :  { %3646 = vtanh.f32 %v632_v40  ;;  %v726_v59 = vrot.slane %v632_v40, 6 }
 0xa81   :  { %v3647_v41 = vpop.eup %3646 }
 0xa82   :  { %635 = vrot.lane.b32.xlu0 %v3647_v41, %s3945_s0 }
 0xaf4   :  { %v636_v42 = vpop.permute.xlu0 %635 }
 0xaf5   :  { %v638_v43 = vmul.f32 %v636_v42, %v618_v35 }
 0xaf7   :  { %v640_v44 = vrot.slane %v638_v43, 6  ;;  %v4168_v45 = vsel %vm1075_vm9, %v1074_v23, %v638_v43 }
 0xaf9   :  { %641 = vrot.lane.b32.xlu1 %v640_v44, %s3946_s2 }
 0xb6b   :  { %v642_v46 = vpop.permute.xlu1 %641 }
 0xb6c   :  { %3360 = vmatmul.mubr.msk.f32.vlgmr.msra.gmra.mxu1 %vm206_vm6, %v642_v46 }
 0xb6d   :  { %3374 = vmatpush3.msra.mxu1 %v4034_v2  ;;  %3381 = vmatprep.mubr.msk.f32.mxu1 %vm3944_vm0, %v3943_v0 }
 0xb6e   :  { %3375 = vmatprep.subr.mxu1 %v3943_v0 }
 0xb6f   :  { %3376 = vmatpush3.msra.mxu1 %v4040_v4 }
 0xb70   :  { %3377 = vmatprep.subr.mxu1 %v3943_v0 }
 0xb71   :  { %3378 = vmatpush3.msra.mxu1 %v4053_v7 }
 0xb72   :  { %3379 = vmatprep.subr.mxu1 %v3943_v0 }
 0xb73   :  { %3380 = vmatpush3.msra.mxu1 %v4059_v8 }
 0xc2c   :  { %v711_v47 = vpop.f32.mrf.mxu1 }
 0xc2d   :  { %v715_v48 = vadd.f32 %v4087_v9, %v711_v47 }
 0xc2e   :  { %v3361_v49 = vpop.f32.mrf.mxu1 }
 0xc2f   :  { %v716_v50 = vadd.f32 %v4091_v11, %v715_v48 }
 0xc31   :  { %v3114_v51 = vmul.f32 -1.442695, %v716_v50 }
 0xc33   :  { %3648 = vpow2.f32 %v3114_v51 }
 0xc34   :  { %3650 = vtanh.f32 %v716_v50 }
 0xc40   :  { %v3649_v52 = vpop.eup %3648 }
 0xc41   :  { %v721_v53 = vadd.f32 1.0, %v3649_v52  ;;  %v3651_v54 = vpop.eup %3650 }
 0xc43   :  { %3652 = vrcp.f32 %v721_v53 }
 0xc50   :  { %v3653_v55 = vpop.eup %3652 }
 0xc51   :  { %v724_v56 = vsel %vm4095_vm5, %v3651_v54, %v3653_v55 }
 0xc52   :  { %730 = vrot.lane.b32.xlu0 %v724_v56, %s3945_s0  ;;  %v728_v60 = vmul.f32 %v726_v59, %v724_v56 }
 0xcc4   :  { %v731_v57 = vpop.permute.xlu0 %730 }
 0xcc5   :  { %v733_v58 = vmul.f32 %v731_v57, %v724_v56 }
 0xcc7   :  { %735 = vrot.lane.b32.xlu1 %v733_v58, %s3946_s2 }
 0xd39   :  { %v736_v61 = vpop.permute.xlu1 %735 }
 0xd3a   :  { %v738_v62 = vadd.f32 %v736_v61, %v728_v60 }
 0xd3c   :  { %3654 = vtanh.f32 %v738_v62  ;;  %v834_v20 = vrot.slane %v738_v62, 6 }
 0xd49   :  { %v3655_v63 = vpop.eup %3654 }
 0xd4a   :  { %741 = vrot.lane.b32.xlu0 %v3655_v63, %s3945_s0 }
 0xdbc   :  { %v742_v1 = vpop.permute.xlu0 %741 }
 0xdbd   :  { %v4188_v3 = vmul.f32 %v742_v1, %v724_v56 }
 0xdbf   :  { %746 = vrot.lane.b32.xlu1 %v4188_v3, %s3946_s2 }
 0xe31   :  { %v747_v5 = vpop.permute.xlu1 %746 }
 0xe32   :  { %3371 = vmatmul.mubr.msk.f32.vlgmr.msra.gmra.mxu0 %vm206_vm6, %v747_v5 }
 0xe33   :  { %3385 = vmatpush3.msra.mxu0 %v4034_v2  ;;  %3392 = vmatprep.mubr.msk.f32.mxu0 %vm3944_vm0, %v3943_v0 }
 0xe34   :  { %3386 = vmatprep.subr.mxu0 %v3943_v0 }
 0xe35   :  { %3387 = vmatpush3.msra.mxu0 %v4040_v4 }
 0xe36   :  { %3388 = vmatprep.subr.mxu0 %v3943_v0 }
 0xe37   :  { %3389 = vmatpush3.msra.mxu0 %v4053_v7 }
 0xe38   :  { %3390 = vmatprep.subr.mxu0 %v3943_v0 }
 0xe39   :  { %3391 = vmatpush3.msra.mxu0 %v4059_v8 }
 0xe3a   :  { %3406 = vmatprep.subr.mxu0 %v3943_v0 }
 0xef2   :  { %v816_v6 = vpop.f32.mrf.mxu0 }
 0xef3   :  { %v821_v12 = vrot.slane %v816_v6, 6 }
 0xef4   :  { %v3372_v2 = vpop.f32.mrf.mxu0 }
 0xef5   :  { %v823_v13 = vadd.f32 %v4087_v9, %v821_v12 }
 0xef7   :  { %v824_v14 = vadd.f32 %v4091_v11, %v823_v13  ;;  %v1083_v13 = vld [vmem:[%s4650_s4 + $0x18] sm:$0xff] }
 0xef8   :  { %3395 = vmatprep.subr.mxu1 %v1083_v13 }
 0xef9   :  { %v3116_v15 = vmul.f32 -1.442695, %v824_v14 }
 0xefb   :  { %3656 = vpow2.f32 %v3116_v15  ;;  %v4252_v15 = vld [vmem:[%s4651_s5 + $0x10] sm:$0xff] }
 0xefc   :  { %3658 = vtanh.f32 %v824_v14  ;;  %v4243_v14 = vld [vmem:[%s4651_s5 + $0x18] sm:$0xff] }
 0xf08   :  { %v3657_v4 = vpop.eup %3656 }
 0xf09   :  { %v829_v16 = vadd.f32 1.0, %v3657_v4  ;;  %v3659_v7 = vpop.eup %3658  ;;  %v1081_v4 = vld [vmem:[%s4650_s4 + $0x8] sm:$0xff] }
 0xf0b   :  { %3660 = vrcp.f32 %v829_v16  ;;  %v4261_v16 = vld [vmem:[%s4651_s5 + $0x8] sm:$0xff] }
 0xf18   :  { %v3661_v17 = vpop.eup %3660 }
 0xf19   :  { %v832_v8 = vsel %vm4095_vm5, %v3659_v7, %v3661_v17  ;;  %v1080_v7 = vld [vmem:[%s4650_s4] sm:$0xff] }
 0xf1a   :  { %838 = vrot.lane.b32.xlu0 %v832_v8, %s3945_s0  ;;  %v836_v22 = vmul.f32 %v834_v20, %v832_v8  ;;  %v4271_v17 = vld [vmem:[%s4651_s5] sm:$0xff] }
 0xf8c   :  { %v839_v18 = vpop.permute.xlu0 %838 }
 0xf8d   :  { %v841_v19 = vmul.f32 %v839_v18, %v832_v8 }
 0xf8f   :  { %843 = vrot.lane.b32.xlu1 %v841_v19, %s3946_s2 }
0x1001   :  { %v844_v23 = vpop.permute.xlu1 %843 }
0x1002   :  { %v846_v24 = vadd.f32 %v844_v23, %v836_v22 }
0x1004   :  { %3662 = vtanh.f32 %v846_v24  ;;  %v943_v42 = vrot.slane %v846_v24, 6 }
0x1011   :  { %v3663_v25 = vpop.eup %3662 }
0x1012   :  { %849 = vrot.lane.b32.xlu0 %v3663_v25, %s3945_s0 }
0x1084   :  { %v850_v26 = vpop.permute.xlu0 %849 }
0x1085   :  { %v852_v27 = vmul.f32 %v850_v26, %v832_v8 }
0x1087   :  { %v854_v28 = vrot.slane %v852_v27, 2  ;;  %v1077_v50 = vsel %vm1071_vm7, %v4188_v3, %v852_v27  ;;  %v4311_v27 = vld [vmem:[%s4652_s6] ss:$0 sm:$0xff] }
0x1089   :  { %855 = vrot.lane.b32.xlu1 %v854_v28, %s3946_s2 }
0x10fb   :  { %v856_v29 = vpop.permute.xlu1 %855 }
0x10fc   :  { %3382 = vmatmul.mubr.msk.f32.vlgmr.msra.gmra.mxu1 %vm206_vm6, %v856_v29 }
0x10fd   :  { %3396 = vmatpush3.msra.mxu1 %v1083_v13 }
0x11bc   :  { %v925_v30 = vpop.f32.mrf.mxu1 }
0x11bd   :  { %v930_v31 = vrot.slane %v925_v30, 4 }
0x11be   :  { %v3383_v32 = vpop.f32.mrf.mxu1 }
0x11bf   :  { %v932_v33 = vadd.f32 %v4087_v9, %v930_v31 }
0x11c1   :  { %v933_v34 = vadd.f32 %v4091_v11, %v932_v33 }
0x11c3   :  { %v3118_v35 = vmul.f32 -1.442695, %v933_v34 }
0x11c5   :  { %3664 = vpow2.f32 %v3118_v35 }
0x11c6   :  { %3666 = vtanh.f32 %v933_v34 }
0x11d2   :  { %v3665_v36 = vpop.eup %3664 }
0x11d3   :  { %v938_v37 = vadd.f32 1.0, %v3665_v36  ;;  %v3667_v10 = vpop.eup %3666 }
0x11d5   :  { %3668 = vrcp.f32 %v938_v37 }
0x11e2   :  { %v3669_v38 = vpop.eup %3668 }
0x11e3   :  { %v941_v39 = vsel %vm4095_vm5, %v3667_v10, %v3669_v38 }
0x11e4   :  { %947 = vrot.lane.b32.xlu0 %v941_v39, %s3945_s0  ;;  %v945_v43 = vmul.f32 %v943_v42, %v941_v39 }
0x1256   :  { %v948_v40 = vpop.permute.xlu0 %947 }
0x1257   :  { %v950_v41 = vmul.f32 %v948_v40, %v941_v39 }
0x1259   :  { %952 = vrot.lane.b32.xlu1 %v950_v41, %s3946_s2 }
0x12cb   :  { %v953_v44 = vpop.permute.xlu1 %952 }
0x12cc   :  { %v955_v46 = vadd.f32 %v953_v44, %v945_v43 }
0x12ce   :  { %3670 = vtanh.f32 %v955_v46 }
0x12db   :  { %v3671_v47 = vpop.eup %3670 }
0x12dc   :  { %958 = vrot.lane.b32.xlu0 %v3671_v47, %s3945_s0 }
0x134e   :  { %v959_v48 = vpop.permute.xlu0 %958 }
0x134f   :  { %v961_v49 = vmul.f32 %v959_v48, %v941_v39 }
0x1351   :  { %v963_v51 = vrot.slane %v961_v49, 4  ;;  %v4222_v52 = vsel %vm1073_vm8, %v1077_v50, %v961_v49 }
0x1353   :  { %964 = vrot.lane.b32.xlu1 %v963_v51, %s3946_s2 }
0x13c5   :  { %v965_v53 = vpop.permute.xlu1 %964 }
0x13c6   :  { %3393 = vmatmul.mubr.msk.f32.vlgmr.msra.gmra.mxu0 %vm206_vm6, %v965_v53 }
0x13c7   :  { %3414 = vmatprep.mubr.msk.f32.mxu0 %vm3944_vm0, %v3943_v0  ;;  %3407 = vmatpush3.msra.mxu0 %v4243_v14 }
0x13c8   :  { %3408 = vmatprep.subr.mxu0 %v3943_v0 }
0x13c9   :  { %3409 = vmatpush3.msra.mxu0 %v4252_v15 }
0x13ca   :  { %3410 = vmatprep.subr.mxu0 %v3943_v0 }
0x13cb   :  { %3411 = vmatpush3.msra.mxu0 %v4261_v16 }
0x13cc   :  { %3412 = vmatprep.subr.mxu0 %v3943_v0 }
0x13cd   :  { %3413 = vmatpush3.msra.mxu0 %v4271_v17 }
0x13ce   :  { %3415 = vmatmul.mubr.f32.vlgmr.msra.gmra.mxu0 %v3943_v0  ;;  %3428 = vmatprep.subr.mxu0 %v3943_v0 }
0x13cf   :  { %3429 = vmatpush3.msra.mxu0 %v4243_v14  ;;  %3436 = vmatprep.mubr.msk.f32.mxu0 %vm3944_vm0, %v3943_v0 }
0x13d0   :  { %3430 = vmatprep.subr.mxu0 %v3943_v0 }
0x13d1   :  { %3431 = vmatpush3.msra.mxu0 %v4252_v15 }
0x13d2   :  { %3432 = vmatprep.subr.mxu0 %v3943_v0 }
0x13d3   :  { %3433 = vmatpush3.msra.mxu0 %v4261_v16 }
0x13d4   :  { %3434 = vmatprep.subr.mxu0 %v3943_v0 }
0x13d5   :  { %3435 = vmatpush3.msra.mxu0 %v4271_v17 }
0x13d6   :  { %3450 = vmatprep.subr.mxu0 %v3943_v0 }
0x1486   :  { %v1034_v54 = vpop.f32.mrf.mxu0 }
0x1487   :  { %v1039_v55 = vrot.slane %v1034_v54, 2 }
0x1488   :  { %v3394_v56 = vpop.f32.mrf.mxu0 }
0x1489   :  { %v1041_v57 = vadd.f32 %v4087_v9, %v1039_v55  ;;  %v1052_v9 = vrot.slane %v955_v46, 6 }
0x148b   :  { %v1042_v58 = vadd.f32 %v4091_v11, %v1041_v57 }
0x148d   :  { %v3120_v59 = vmul.f32 -1.442695, %v1042_v58 }
0x148e   :  { %v1240_v23 = vpop.f32.mrf.mxu0 }
0x148f   :  { %3672 = vpow2.f32 %v3120_v59 }
0x1490   :  { %3674 = vtanh.f32 %v1042_v58  ;;  %v3416_v24 = vpop.f32.mrf.mxu0 }
0x149c   :  { %v3673_v60 = vpop.eup %3672 }
0x149d   :  { %v1047_v61 = vadd.f32 1.0, %v3673_v60  ;;  %v3675_v62 = vpop.eup %3674 }
0x149f   :  { %3676 = vrcp.f32 %v1047_v61 }
0x14ac   :  { %v3677_v63 = vpop.eup %3676 }
0x14ad   :  { %v1050_v1 = vsel %vm4095_vm5, %v3675_v62, %v3677_v63 }
0x14ae   :  { %1056 = vrot.lane.b32.xlu0 %v1050_v1, %s3945_s0  ;;  %v1054_v11 = vmul.f32 %v1052_v9, %v1050_v1 }
0x1520   :  { %v1057_v3 = vpop.permute.xlu0 %1056 }
0x1521   :  { %v1059_v5 = vmul.f32 %v1057_v3, %v1050_v1 }
0x1523   :  { %1061 = vrot.lane.b32.xlu1 %v1059_v5, %s3946_s2 }
0x1527   :  { %1086 = vrot.lane.b32.xlu1 %v4168_v45, %s3946_s2  ;;  %v1082_v45 = vld [vmem:[%s4650_s4 + $0x10] sm:$0xff] }
0x1528   :  { %3397 = vmatprep.subr.mxu1 %v1082_v45 }
0x1529   :  { %3398 = vmatpush3.msra.mxu1 %v1082_v45 }
0x152a   :  { %3399 = vmatprep.subr.mxu1 %v1081_v4 }
0x152b   :  { %3400 = vmatpush3.msra.mxu1 %v1081_v4 }
0x152c   :  { %3401 = vmatprep.subr.mxu1 %v1080_v7 }
0x152d   :  { %3402 = vmatpush3.msra.mxu1 %v1080_v7 }
0x152e   :  { %3417 = vmatprep.subr.mxu1 %v3943_v0 }
0x1595   :  { %v1062_v6 = vpop.permute.xlu1 %1061 }
0x1596   :  { %v1064_v12 = vadd.f32 %v1062_v6, %v1054_v11 }
0x1598   :  { %3678 = vtanh.f32 %v1064_v12 }
0x1599   :  { %v1087_v2 = vpop.permute.xlu1 %1086 }
0x159a   :  { %3403 = vmatprep.mubr.msk.f32.mxu1 %vm206_vm6, %v1087_v2 }
0x15a5   :  { %v3679_v8 = vpop.eup %3678 }
0x15a6   :  { %1067 = vrot.lane.b32.xlu0 %v3679_v8, %s3945_s0 }
0x1618   :  { %v1068_v18 = vpop.permute.xlu0 %1067 }
0x1619   :  { %v1070_v19 = vmul.f32 %v1068_v18, %v1050_v1 }
0x161b   :  { %v1079_v20 = vsel %vm1075_vm9, %v4222_v52, %v1070_v19 }
0x161c   :  { %1088 = vrot.lane.b32.xlu0 %v1079_v20, %s3946_s2 }
0x168e   :  { %v1089_v22 = vpop.permute.xlu0 %1088 }
0x168f   :  { %3404 = vmatmul.mubr.msk.f32.vlgmr.msra.gmra.mxu1 %vm206_vm6, %v1089_v22 }
0x1690   :  { %3418 = vmatpush3.msra.mxu1 %v4243_v14  ;;  %3425 = vmatprep.mubr.msk.f32.mxu1 %vm3944_vm0, %v3943_v0 }
0x1691   :  { %3419 = vmatprep.subr.mxu1 %v3943_v0 }
0x1692   :  { %3420 = vmatpush3.msra.mxu1 %v4252_v15 }
0x1693   :  { %3421 = vmatprep.subr.mxu1 %v3943_v0 }
0x1694   :  { %3422 = vmatpush3.msra.mxu1 %v4261_v16 }
0x1695   :  { %3423 = vmatprep.subr.mxu1 %v3943_v0 }
0x1696   :  { %3424 = vmatpush3.msra.mxu1 %v4271_v17 }
0x1697   :  { %3439 = vmatprep.subr.mxu1 %v3943_v0 }
0x174f   :  { %v4304_v25 = vpop.f32.mrf.mxu1 }
0x1751   :  { %v4306_v26 = vpop.f32.mrf.mxu1 }
0x1752   :  { %v1244_v28 = vadd.f32 %v1240_v23, %v4306_v26 }
0x1754   :  { %v1251_v29 = vadd.f32 %v4311_v27, %v1244_v28 }
0x1756   :  { %v3124_v30 = vmul.f32 -1.442695, %v1251_v29 }
0x1758   :  { %3680 = vpow2.f32 %v3124_v30 }
0x1759   :  { %3682 = vtanh.f32 %v1251_v29 }
0x1765   :  { %v3681_v31 = vpop.eup %3680 }
0x1766   :  { %v1256_v32 = vadd.f32 1.0, %v3681_v31  ;;  %v3683_v33 = vpop.eup %3682 }
0x1768   :  { %3684 = vrcp.f32 %v1256_v32 }
0x1775   :  { %v3685_v34 = vpop.eup %3684 }
0x1776   :  { %v1259_v35 = vsel %vm4095_vm5, %v3683_v33, %v3685_v34 }
0x1777   :  { %1262 = vrot.lane.b32.xlu1 %v1259_v35, %s3945_s0  ;;  %v1260_v10 = vmul.f32 0.0, %v1259_v35 }
0x17e9   :  { %v1263_v36 = vpop.permute.xlu1 %1262 }
0x17ea   :  { %v1265_v37 = vmul.f32 %v1263_v36, %v1259_v35 }
0x17ec   :  { %1267 = vrot.lane.b32.xlu0 %v1265_v37, %s3946_s2 }
0x185e   :  { %v1268_v38 = vpop.permute.xlu0 %1267 }
0x185f   :  { %v1270_v39 = vadd.f32 %v1268_v38, %v1260_v10 }
0x1861   :  { %3686 = vtanh.f32 %v1270_v39  ;;  %v1366_v58 = vrot.slane %v1270_v39, 6 }
0x186e   :  { %v3687_v40 = vpop.eup %3686 }
0x186f   :  { %1273 = vrot.lane.b32.xlu1 %v3687_v40, %s3945_s0 }
0x18e1   :  { %v1274_v41 = vpop.permute.xlu1 %1273 }
0x18e2   :  { %v4320_v42 = vmul.f32 %v1274_v41, %v1259_v35 }
0x18e4   :  { %1278 = vrot.lane.b32.xlu0 %v4320_v42, %s3946_s2 }
0x1956   :  { %v1279_v43 = vpop.permute.xlu0 %1278 }
0x1957   :  { %3426 = vmatmul.mubr.msk.f32.vlgmr.msra.gmra.mxu1 %vm206_vm6, %v1279_v43 }
0x1958   :  { %3440 = vmatpush3.msra.mxu1 %v4243_v14  ;;  %3447 = vmatprep.mubr.msk.f32.mxu1 %vm3944_vm0, %v3943_v0 }
0x1959   :  { %3441 = vmatprep.subr.mxu1 %v3943_v0 }
0x195a   :  { %3442 = vmatpush3.msra.mxu1 %v4252_v15 }
0x195b   :  { %3443 = vmatprep.subr.mxu1 %v3943_v0 }
0x195c   :  { %3444 = vmatpush3.msra.mxu1 %v4261_v16 }
0x195d   :  { %3445 = vmatprep.subr.mxu1 %v3943_v0 }
0x195e   :  { %3446 = vmatpush3.msra.mxu1 %v4271_v17 }
0x195f   :  { %3461 = vmatprep.subr.mxu1 %v3943_v0 }
0x1a17   :  { %v1348_v44 = vpop.f32.mrf.mxu1 }
0x1a18   :  { %v1353_v46 = vrot.slane %v1348_v44, 6 }
0x1a19   :  { %v3427_v47 = vpop.f32.mrf.mxu1 }
0x1a1a   :  { %v1355_v48 = vadd.f32 %v1353_v46, %v4306_v26 }
0x1a1c   :  { %v1356_v49 = vadd.f32 %v4311_v27, %v1355_v48 }
0x1a1e   :  { %v3126_v50 = vmul.f32 -1.442695, %v1356_v49 }
0x1a20   :  { %3688 = vpow2.f32 %v3126_v50 }
0x1a21   :  { %3690 = vtanh.f32 %v1356_v49 }
0x1a2d   :  { %v3689_v51 = vpop.eup %3688 }
0x1a2e   :  { %v1361_v52 = vadd.f32 1.0, %v3689_v51  ;;  %v3691_v53 = vpop.eup %3690 }
0x1a30   :  { %3692 = vrcp.f32 %v1361_v52 }
0x1a3d   :  { %v3693_v54 = vpop.eup %3692 }
0x1a3e   :  { %v1364_v55 = vsel %vm4095_vm5, %v3691_v53, %v3693_v54 }
0x1a3f   :  { %1370 = vrot.lane.b32.xlu1 %v1364_v55, %s3945_s0  ;;  %v1368_v59 = vmul.f32 %v1366_v58, %v1364_v55 }
0x1ab1   :  { %v1371_v56 = vpop.permute.xlu1 %1370 }
0x1ab2   :  { %v1373_v57 = vmul.f32 %v1371_v56, %v1364_v55 }
0x1ab4   :  { %1375 = vrot.lane.b32.xlu0 %v1373_v57, %s3946_s2 }
0x1b26   :  { %v1376_v60 = vpop.permute.xlu0 %1375 }
0x1b27   :  { %v1378_v61 = vadd.f32 %v1376_v60, %v1368_v59 }
0x1b29   :  { %3694 = vtanh.f32 %v1378_v61  ;;  %v1475_v22 = vrot.slane %v1378_v61, 6 }
0x1b36   :  { %v3695_v62 = vpop.eup %3694 }
0x1b37   :  { %1381 = vrot.lane.b32.xlu1 %v3695_v62, %s3945_s0 }
0x1ba9   :  { %v1382_v63 = vpop.permute.xlu1 %1381 }
0x1baa   :  { %v1384_v1 = vmul.f32 %v1382_v63, %v1364_v55 }
0x1bac   :  { %v1386_v3 = vrot.slane %v1384_v1, 2  ;;  %v2035_v32 = vsel %vm1071_vm7, %v4320_v42, %v1384_v1 }
0x1bae   :  { %1387 = vrot.lane.b32.xlu0 %v1386_v3, %s3946_s2 }
0x1c20   :  { %v1388_v5 = vpop.permute.xlu0 %1387 }
0x1c21   :  { %3437 = vmatmul.mubr.msk.f32.vlgmr.msra.gmra.mxu0 %vm206_vm6, %v1388_v5 }
0x1c22   :  { %3451 = vmatpush3.msra.mxu0 %v4243_v14  ;;  %3458 = vmatprep.mubr.msk.f32.mxu0 %vm3944_vm0, %v3943_v0 }
0x1c23   :  { %3452 = vmatprep.subr.mxu0 %v3943_v0 }
0x1c24   :  { %3453 = vmatpush3.msra.mxu0 %v4252_v15 }
0x1c25   :  { %3454 = vmatprep.subr.mxu0 %v3943_v0 }
0x1c26   :  { %3455 = vmatpush3.msra.mxu0 %v4261_v16 }
0x1c27   :  { %3456 = vmatprep.subr.mxu0 %v3943_v0 }
0x1c28   :  { %3457 = vmatpush3.msra.mxu0 %v4271_v17 }
0x1c29   :  { %3472 = vmatprep.subr.mxu0 %v3943_v0 }
0x1ce1   :  { %v1457_v9 = vpop.f32.mrf.mxu0 }
0x1ce2   :  { %v1462_v11 = vrot.slane %v1457_v9, 4 }
0x1ce3   :  { %v3438_v6 = vpop.f32.mrf.mxu0 }
0x1ce4   :  { %v1464_v12 = vadd.f32 %v1462_v11, %v4306_v26 }
0x1ce6   :  { %v1465_v2 = vadd.f32 %v4311_v27, %v1464_v12 }
0x1ce8   :  { %v3128_v13 = vmul.f32 -1.442695, %v1465_v2 }
0x1cea   :  { %3696 = vpow2.f32 %v3128_v13 }
0x1ceb   :  { %3698 = vtanh.f32 %v1465_v2 }
0x1cf7   :  { %v3697_v45 = vpop.eup %3696 }
0x1cf8   :  { %v1470_v4 = vadd.f32 1.0, %v3697_v45  ;;  %v3699_v7 = vpop.eup %3698 }
0x1cfa   :  { %3700 = vrcp.f32 %v1470_v4 }
0x1d07   :  { %v3701_v8 = vpop.eup %3700 }
0x1d08   :  { %v1473_v18 = vsel %vm4095_vm5, %v3699_v7, %v3701_v8 }
0x1d09   :  { %1479 = vrot.lane.b32.xlu1 %v1473_v18, %s3945_s0  ;;  %v1477_v23 = vmul.f32 %v1475_v22, %v1473_v18 }
0x1d7b   :  { %v1480_v19 = vpop.permute.xlu1 %1479 }
0x1d7c   :  { %v1482_v20 = vmul.f32 %v1480_v19, %v1473_v18 }
0x1d7e   :  { %1484 = vrot.lane.b32.xlu0 %v1482_v20, %s3946_s2 }
0x1df0   :  { %v1485_v24 = vpop.permute.xlu0 %1484 }
0x1df1   :  { %v1487_v28 = vadd.f32 %v1485_v24, %v1477_v23 }
0x1df3   :  { %3702 = vtanh.f32 %v1487_v28 }
0x1e00   :  { %v3703_v29 = vpop.eup %3702 }
0x1e01   :  { %1490 = vrot.lane.b32.xlu1 %v3703_v29, %s3945_s0 }
0x1e73   :  { %v1491_v30 = vpop.permute.xlu1 %1490 }
0x1e74   :  { %v1493_v31 = vmul.f32 %v1491_v30, %v1473_v18 }
0x1e76   :  { %v1495_v33 = vrot.slane %v1493_v31, 4  ;;  %v2036_v34 = vsel %vm1073_vm8, %v2035_v32, %v1493_v31 }
0x1e78   :  { %1496 = vrot.lane.b32.xlu0 %v1495_v33, %s3946_s2 }
0x1eea   :  { %v1497_v35 = vpop.permute.xlu0 %1496 }
0x1eeb   :  { %3448 = vmatmul.mubr.msk.f32.vlgmr.msra.gmra.mxu1 %vm206_vm6, %v1497_v35 }
0x1eec   :  { %3462 = vmatpush3.msra.mxu1 %v4243_v14  ;;  %3469 = vmatprep.mubr.msk.f32.mxu1 %vm3944_vm0, %v3943_v0 }
0x1eed   :  { %3463 = vmatprep.subr.mxu1 %v3943_v0 }
0x1eee   :  { %3464 = vmatpush3.msra.mxu1 %v4252_v15 }
0x1eef   :  { %3465 = vmatprep.subr.mxu1 %v3943_v0 }
0x1ef0   :  { %3466 = vmatpush3.msra.mxu1 %v4261_v16 }
0x1ef1   :  { %3467 = vmatprep.subr.mxu1 %v3943_v0 }
0x1ef2   :  { %3468 = vmatpush3.msra.mxu1 %v4271_v17 }
0x1ef3   :  { %3483 = vmatprep.subr.mxu1 %v3943_v0 }
0x1fab   :  { %v1566_v36 = vpop.f32.mrf.mxu1 }
0x1fac   :  { %v1571_v37 = vrot.slane %v1566_v36, 2 }
0x1fad   :  { %v3449_v10 = vpop.f32.mrf.mxu1 }
0x1fae   :  { %v1573_v38 = vadd.f32 %v1571_v37, %v4306_v26  ;;  %v1584_v26 = vrot.slane %v1487_v28, 6 }
0x1fb0   :  { %v1574_v39 = vadd.f32 %v4311_v27, %v1573_v38 }
0x1fb2   :  { %v3130_v40 = vmul.f32 -1.442695, %v1574_v39 }
0x1fb4   :  { %3704 = vpow2.f32 %v3130_v40 }
0x1fb5   :  { %3706 = vtanh.f32 %v1574_v39 }
0x1fc1   :  { %v3705_v41 = vpop.eup %3704 }
0x1fc2   :  { %v1579_v42 = vadd.f32 1.0, %v3705_v41  ;;  %v3707_v43 = vpop.eup %3706 }
0x1fc4   :  { %3708 = vrcp.f32 %v1579_v42 }
0x1fd1   :  { %v3709_v44 = vpop.eup %3708 }
0x1fd2   :  { %v1582_v46 = vsel %vm4095_vm5, %v3707_v43, %v3709_v44 }
0x1fd3   :  { %1588 = vrot.lane.b32.xlu1 %v1582_v46, %s3945_s0  ;;  %v1586_v49 = vmul.f32 %v1584_v26, %v1582_v46 }
0x2045   :  { %v1589_v47 = vpop.permute.xlu1 %1588 }
0x2046   :  { %v1591_v48 = vmul.f32 %v1589_v47, %v1582_v46 }
0x2048   :  { %1593 = vrot.lane.b32.xlu0 %v1591_v48, %s3946_s2 }
0x20ba   :  { %v1594_v50 = vpop.permute.xlu0 %1593 }
0x20bb   :  { %v1596_v51 = vadd.f32 %v1594_v50, %v1586_v49 }
0x20bd   :  { %3710 = vtanh.f32 %v1596_v51  ;;  %v1690_v12 = vrot.slane %v1596_v51, 6 }
0x20ca   :  { %v3711_v52 = vpop.eup %3710 }
0x20cb   :  { %1599 = vrot.lane.b32.xlu1 %v3711_v52, %s3945_s0 }
0x213d   :  { %v1600_v53 = vpop.permute.xlu1 %1599 }
0x213e   :  { %v1602_v54 = vmul.f32 %v1600_v53, %v1582_v46 }
0x2140   :  { %v1604_v55 = vrot.slane %v1602_v54, 6  ;;  %v4384_v56 = vsel %vm1075_vm9, %v2036_v34, %v1602_v54 }
0x2142   :  { %1605 = vrot.lane.b32.xlu0 %v1604_v55, %s3946_s2 }
0x21b4   :  { %v1606_v57 = vpop.permute.xlu0 %1605 }
0x21b5   :  { %3459 = vmatmul.mubr.msk.f32.vlgmr.msra.gmra.mxu0 %vm206_vm6, %v1606_v57 }
0x21b6   :  { %3473 = vmatpush3.msra.mxu0 %v4243_v14  ;;  %3480 = vmatprep.mubr.msk.f32.mxu0 %vm3944_vm0, %v3943_v0 }
0x21b7   :  { %3474 = vmatprep.subr.mxu0 %v3943_v0 }
0x21b8   :  { %3475 = vmatpush3.msra.mxu0 %v4252_v15 }
0x21b9   :  { %3476 = vmatprep.subr.mxu0 %v3943_v0 }
0x21ba   :  { %3477 = vmatpush3.msra.mxu0 %v4261_v16 }
0x21bb   :  { %3478 = vmatprep.subr.mxu0 %v3943_v0 }
0x21bc   :  { %3479 = vmatpush3.msra.mxu0 %v4271_v17 }
0x2275   :  { %v1675_v58 = vpop.f32.mrf.mxu0 }
0x2276   :  { %v1679_v59 = vadd.f32 %v4304_v25, %v1675_v58 }
0x2277   :  { %v3460_v60 = vpop.f32.mrf.mxu0 }
0x2278   :  { %v1680_v61 = vadd.f32 %v4311_v27, %v1679_v59 }
0x227a   :  { %v3132_v62 = vmul.f32 -1.442695, %v1680_v61 }
0x227c   :  { %3712 = vpow2.f32 %v3132_v62 }
0x227d   :  { %3714 = vtanh.f32 %v1680_v61 }
0x2289   :  { %v3713_v63 = vpop.eup %3712 }
0x228a   :  { %v1685_v1 = vadd.f32 1.0, %v3713_v63  ;;  %v3715_v3 = vpop.eup %3714 }
0x228c   :  { %3716 = vrcp.f32 %v1685_v1 }
0x2299   :  { %v3717_v5 = vpop.eup %3716 }
0x229a   :  { %v1688_v9 = vsel %vm4095_vm5, %v3715_v3, %v3717_v5 }
0x229b   :  { %1694 = vrot.lane.b32.xlu1 %v1688_v9, %s3945_s0  ;;  %v1692_v2 = vmul.f32 %v1690_v12, %v1688_v9 }
0x230d   :  { %v1695_v11 = vpop.permute.xlu1 %1694 }
0x230e   :  { %v1697_v6 = vmul.f32 %v1695_v11, %v1688_v9 }
0x2310   :  { %1699 = vrot.lane.b32.xlu0 %v1697_v6, %s3946_s2 }
0x2382   :  { %v1700_v13 = vpop.permute.xlu0 %1699 }
0x2383   :  { %v1702_v45 = vadd.f32 %v1700_v13, %v1692_v2 }
0x2385   :  { %3718 = vtanh.f32 %v1702_v45  ;;  %v1798_v32 = vrot.slane %v1702_v45, 6 }
0x2392   :  { %v3719_v4 = vpop.eup %3718 }
0x2393   :  { %1705 = vrot.lane.b32.xlu1 %v3719_v4, %s3945_s0 }
0x2405   :  { %v1706_v7 = vpop.permute.xlu1 %1705 }
0x2406   :  { %v4404_v8 = vmul.f32 %v1706_v7, %v1688_v9 }
0x2408   :  { %1710 = vrot.lane.b32.xlu0 %v4404_v8, %s3946_s2 }
0x247a   :  { %v1711_v18 = vpop.permute.xlu0 %1710 }
0x247b   :  { %3470 = vmatmul.mubr.msk.f32.vlgmr.msra.gmra.mxu1 %vm206_vm6, %v1711_v18 }
0x247c   :  { %3484 = vmatpush3.msra.mxu1 %v4243_v14  ;;  %3491 = vmatprep.mubr.msk.f32.mxu1 %vm3944_vm0, %v3943_v0 }
0x247d   :  { %3485 = vmatprep.subr.mxu1 %v3943_v0 }
0x247e   :  { %3486 = vmatpush3.msra.mxu1 %v4252_v15 }
0x247f   :  { %3487 = vmatprep.subr.mxu1 %v3943_v0 }
0x2480   :  { %3488 = vmatpush3.msra.mxu1 %v4261_v16 }
0x2481   :  { %3489 = vmatprep.subr.mxu1 %v3943_v0 }
0x2482   :  { %3490 = vmatpush3.msra.mxu1 %v4271_v17 }
0x2483   :  { %3505 = vmatprep.subr.mxu1 %v3943_v0 }
0x253b   :  { %v1780_v19 = vpop.f32.mrf.mxu1 }
0x253c   :  { %v1785_v20 = vrot.slane %v1780_v19, 6 }
0x253d   :  { %v3471_v14 = vpop.f32.mrf.mxu1 }
0x253e   :  { %v1787_v22 = vadd.f32 %v4304_v25, %v1785_v20 }
0x2540   :  { %v1788_v23 = vadd.f32 %v4311_v27, %v1787_v22  ;;  %v2044_v22 = vld [vmem:[#allocation7 + $0x18] sm:$0xff] }
0x2541   :  { %3494 = vmatprep.subr.mxu0 %v2044_v22 }
0x2542   :  { %v3134_v24 = vmul.f32 -1.442695, %v1788_v23 }
0x2544   :  { %3720 = vpow2.f32 %v3134_v24  ;;  %v2043_v24 = vld [vmem:[#allocation7 + $0x10] sm:$0xff] }
0x2545   :  { %3722 = vtanh.f32 %v1788_v23  ;;  %v4453_v23 = vld [vmem:[#allocation8 + $0x18] sm:$0xff] }
0x2551   :  { %v3721_v15 = vpop.eup %3720 }
0x2552   :  { %v1793_v28 = vadd.f32 1.0, %v3721_v15  ;;  %v3723_v16 = vpop.eup %3722  ;;  %v4456_v15 = vld [vmem:[#allocation8 + $0x10] sm:$0xff] }
0x2554   :  { %3724 = vrcp.f32 %v1793_v28  ;;  %v4459_v28 = vld [vmem:[#allocation8 + $0x8] sm:$0xff] }
0x2561   :  { %v3725_v29 = vpop.eup %3724 }
0x2562   :  { %v1796_v17 = vsel %vm4095_vm5, %v3723_v16, %v3725_v29  ;;  %v2041_v16 = vld [vmem:[#allocation7] sm:$0xff] }
0x2563   :  { %1802 = vrot.lane.b32.xlu1 %v1796_v17, %s3945_s0  ;;  %v1800_v33 = vmul.f32 %v1798_v32, %v1796_v17  ;;  %v4463_v29 = vld [vmem:[#allocation8] sm:$0xff] }
0x25d5   :  { %v1803_v30 = vpop.permute.xlu1 %1802 }
0x25d6   :  { %v1805_v31 = vmul.f32 %v1803_v30, %v1796_v17 }
0x25d8   :  { %1807 = vrot.lane.b32.xlu0 %v1805_v31, %s3946_s2 }
0x264a   :  { %v1808_v34 = vpop.permute.xlu0 %1807 }
0x264b   :  { %v1810_v35 = vadd.f32 %v1808_v34, %v1800_v33 }
0x264d   :  { %3726 = vtanh.f32 %v1810_v35  ;;  %v1907_v53 = vrot.slane %v1810_v35, 6 }
0x265a   :  { %v3727_v36 = vpop.eup %3726 }
0x265b   :  { %1813 = vrot.lane.b32.xlu1 %v3727_v36, %s3945_s0 }
0x26cd   :  { %v1814_v37 = vpop.permute.xlu1 %1813 }
0x26ce   :  { %v1816_v10 = vmul.f32 %v1814_v37, %v1796_v17 }
0x26d0   :  { %v1818_v38 = vrot.slane %v1816_v10, 2  ;;  %v2038_v61 = vsel %vm1071_vm7, %v4404_v8, %v1816_v10  ;;  %v4503_v10 = vld [vmem:[%s4655_s9] ss:$0 sm:$0xff] }
0x26d2   :  { %1819 = vrot.lane.b32.xlu0 %v1818_v38, %s3946_s2 }
0x2744   :  { %v1820_v39 = vpop.permute.xlu0 %1819 }
0x2745   :  { %3481 = vmatmul.mubr.msk.f32.vlgmr.msra.gmra.mxu0 %vm206_vm6, %v1820_v39 }
0x2746   :  { %3495 = vmatpush3.msra.mxu0 %v2044_v22 }
0x2747   :  { %3496 = vmatprep.subr.mxu0 %v2043_v24 }
0x2748   :  { %3497 = vmatpush3.msra.mxu0 %v2043_v24 }
0x2805   :  { %v1889_v40 = vpop.f32.mrf.mxu0 }
0x2806   :  { %v1894_v41 = vrot.slane %v1889_v40, 4 }
0x2807   :  { %v3482_v42 = vpop.f32.mrf.mxu0 }
0x2808   :  { %v1896_v43 = vadd.f32 %v4304_v25, %v1894_v41 }
0x280a   :  { %v1897_v44 = vadd.f32 %v4311_v27, %v1896_v43 }
0x280c   :  { %v3136_v46 = vmul.f32 -1.442695, %v1897_v44 }
0x280e   :  { %3728 = vpow2.f32 %v3136_v46 }
0x280f   :  { %3730 = vtanh.f32 %v1897_v44 }
0x281b   :  { %v3729_v47 = vpop.eup %3728 }
0x281c   :  { %v1902_v48 = vadd.f32 1.0, %v3729_v47  ;;  %v3731_v26 = vpop.eup %3730 }
0x281e   :  { %3732 = vrcp.f32 %v1902_v48 }
0x282b   :  { %v3733_v49 = vpop.eup %3732 }
0x282c   :  { %v1905_v50 = vsel %vm4095_vm5, %v3731_v26, %v3733_v49 }
0x282d   :  { %1911 = vrot.lane.b32.xlu1 %v1905_v50, %s3945_s0  ;;  %v1909_v54 = vmul.f32 %v1907_v53, %v1905_v50 }
0x289f   :  { %v1912_v51 = vpop.permute.xlu1 %1911 }
0x28a0   :  { %v1914_v52 = vmul.f32 %v1912_v51, %v1905_v50 }
0x28a2   :  { %1916 = vrot.lane.b32.xlu0 %v1914_v52, %s3946_s2 }
0x2914   :  { %v1917_v55 = vpop.permute.xlu0 %1916 }
0x2915   :  { %v1919_v57 = vadd.f32 %v1917_v55, %v1909_v54 }
0x2917   :  { %3734 = vtanh.f32 %v1919_v57 }
0x2924   :  { %v3735_v58 = vpop.eup %3734 }
0x2925   :  { %1922 = vrot.lane.b32.xlu1 %v3735_v58, %s3945_s0 }
0x2997   :  { %v1923_v59 = vpop.permute.xlu1 %1922 }
0x2998   :  { %v1925_v60 = vmul.f32 %v1923_v59, %v1905_v50 }
0x299a   :  { %v1927_v62 = vrot.slane %v1925_v60, 4  ;;  %v4438_v63 = vsel %vm1073_vm8, %v2038_v61, %v1925_v60 }
0x299c   :  { %1928 = vrot.lane.b32.xlu0 %v1927_v62, %s3946_s2 }
0x2a0e   :  { %v1929_v1 = vpop.permute.xlu0 %1928 }
0x2a0f   :  { %3492 = vmatmul.mubr.msk.f32.vlgmr.msra.gmra.mxu1 %vm206_vm6, %v1929_v1 }
0x2a10   :  { %3513 = vmatprep.mubr.msk.f32.mxu1 %vm3944_vm0, %v3943_v0  ;;  %3506 = vmatpush3.msra.mxu1 %v4453_v23 }
0x2a11   :  { %3507 = vmatprep.subr.mxu1 %v3943_v0 }
0x2a12   :  { %3508 = vmatpush3.msra.mxu1 %v4456_v15 }
0x2a13   :  { %3509 = vmatprep.subr.mxu1 %v3943_v0 }
0x2a14   :  { %3510 = vmatpush3.msra.mxu1 %v4459_v28 }
0x2a15   :  { %3511 = vmatprep.subr.mxu1 %v3943_v0 }
0x2a16   :  { %3512 = vmatpush3.msra.mxu1 %v4463_v29 }
0x2a17   :  { %3514 = vmatmul.mubr.f32.vlgmr.msra.gmra.mxu1 %v3943_v0  ;;  %3527 = vmatprep.subr.mxu1 %v3943_v0 }
0x2a18   :  { %3528 = vmatpush3.msra.mxu1 %v4453_v23  ;;  %3535 = vmatprep.mubr.msk.f32.mxu1 %vm3944_vm0, %v3943_v0 }
0x2a19   :  { %3529 = vmatprep.subr.mxu1 %v3943_v0 }
0x2a1a   :  { %3530 = vmatpush3.msra.mxu1 %v4456_v15 }
0x2a1b   :  { %3531 = vmatprep.subr.mxu1 %v3943_v0 }
0x2a1c   :  { %3532 = vmatpush3.msra.mxu1 %v4459_v28 }
0x2a1d   :  { %3533 = vmatprep.subr.mxu1 %v3943_v0 }
0x2a1e   :  { %3534 = vmatpush3.msra.mxu1 %v4463_v29 }
0x2a1f   :  { %3549 = vmatprep.subr.mxu1 %v3943_v0 }
0x2acf   :  { %v1998_v3 = vpop.f32.mrf.mxu1 }
0x2ad0   :  { %v2003_v5 = vrot.slane %v1998_v3, 2 }
0x2ad1   :  { %v3493_v9 = vpop.f32.mrf.mxu1 }
0x2ad2   :  { %v2005_v11 = vadd.f32 %v4304_v25, %v2003_v5  ;;  %v2016_v25 = vrot.slane %v1919_v57, 6 }
0x2ad4   :  { %v2006_v6 = vadd.f32 %v4311_v27, %v2005_v11 }
0x2ad6   :  { %v3138_v12 = vmul.f32 -1.442695, %v2006_v6 }
0x2ad7   :  { %v2201_v34 = vpop.f32.mrf.mxu1 }
0x2ad8   :  { %3736 = vpow2.f32 %v3138_v12 }
0x2ad9   :  { %3738 = vtanh.f32 %v2006_v6  ;;  %v3515_v35 = vpop.f32.mrf.mxu1 }
0x2ae5   :  { %v3737_v2 = vpop.eup %3736 }
0x2ae6   :  { %v2011_v13 = vadd.f32 1.0, %v3737_v2  ;;  %v3739_v45 = vpop.eup %3738 }
0x2ae8   :  { %3740 = vrcp.f32 %v2011_v13 }
0x2af5   :  { %v3741_v4 = vpop.eup %3740 }
0x2af6   :  { %v2014_v7 = vsel %vm4095_vm5, %v3739_v45, %v3741_v4 }
0x2af7   :  { %2020 = vrot.lane.b32.xlu1 %v2014_v7, %s3945_s0  ;;  %v2018_v27 = vmul.f32 %v2016_v25, %v2014_v7 }
0x2b69   :  { %v2021_v8 = vpop.permute.xlu1 %2020 }
0x2b6a   :  { %v2023_v18 = vmul.f32 %v2021_v8, %v2014_v7 }
0x2b6c   :  { %2025 = vrot.lane.b32.xlu0 %v2023_v18, %s3946_s2 }
0x2b70   :  { %2047 = vrot.lane.b32.xlu0 %v4384_v56, %s3946_s2  ;;  %v2042_v56 = vld [vmem:[#allocation7 + $0x8] sm:$0xff] }
0x2b71   :  { %3498 = vmatprep.subr.mxu0 %v2042_v56 }
0x2b72   :  { %3499 = vmatpush3.msra.mxu0 %v2042_v56 }
0x2b73   :  { %3500 = vmatprep.subr.mxu0 %v2041_v16 }
0x2b74   :  { %3501 = vmatpush3.msra.mxu0 %v2041_v16 }
0x2b75   :  { %3516 = vmatprep.subr.mxu0 %v3943_v0 }
0x2bde   :  { %v2026_v19 = vpop.permute.xlu0 %2025 }
0x2bdf   :  { %v2028_v20 = vadd.f32 %v2026_v19, %v2018_v27 }
0x2be1   :  { %3742 = vtanh.f32 %v2028_v20 }
0x2be2   :  { %v2048_v14 = vpop.permute.xlu0 %2047 }
0x2be3   :  { %3502 = vmatprep.mubr.msk.f32.mxu0 %vm206_vm6, %v2048_v14 }
0x2bee   :  { %v3743_v17 = vpop.eup %3742 }
0x2bef   :  { %2031 = vrot.lane.b32.xlu1 %v3743_v17, %s3945_s0 }
0x2c61   :  { %v2032_v30 = vpop.permute.xlu1 %2031 }
0x2c62   :  { %v2034_v31 = vmul.f32 %v2032_v30, %v2014_v7 }
0x2c64   :  { %v2040_v32 = vsel %vm1075_vm9, %v4438_v63, %v2034_v31 }
0x2c65   :  { %2049 = vrot.lane.b32.xlu1 %v2040_v32, %s3946_s2 }
0x2cd7   :  { %v2050_v33 = vpop.permute.xlu1 %2049 }
0x2cd8   :  { %3503 = vmatmul.mubr.msk.f32.vlgmr.msra.gmra.mxu0 %vm206_vm6, %v2050_v33 }
0x2cd9   :  { %3517 = vmatpush3.msra.mxu0 %v4453_v23  ;;  %3524 = vmatprep.mubr.msk.f32.mxu0 %vm3944_vm0, %v3943_v0 }
0x2cda   :  { %3518 = vmatprep.subr.mxu0 %v3943_v0 }
0x2cdb   :  { %3519 = vmatpush3.msra.mxu0 %v4456_v15 }
0x2cdc   :  { %3520 = vmatprep.subr.mxu0 %v3943_v0 }
0x2cdd   :  { %3521 = vmatpush3.msra.mxu0 %v4459_v28 }
0x2cde   :  { %3522 = vmatprep.subr.mxu0 %v3943_v0 }
0x2cdf   :  { %3523 = vmatpush3.msra.mxu0 %v4463_v29 }
0x2ce0   :  { %3538 = vmatprep.subr.mxu0 %v3943_v0 }
0x2d98   :  { %v4496_v36 = vpop.f32.mrf.mxu0 }
0x2d9a   :  { %v4498_v37 = vpop.f32.mrf.mxu0 }
0x2d9b   :  { %v2205_v38 = vadd.f32 %v2201_v34, %v4498_v37 }
0x2d9d   :  { %v2212_v39 = vadd.f32 %v4503_v10, %v2205_v38 }
0x2d9f   :  { %v3142_v40 = vmul.f32 -1.442695, %v2212_v39 }
0x2da1   :  { %3744 = vpow2.f32 %v3142_v40 }
0x2da2   :  { %3746 = vtanh.f32 %v2212_v39 }
0x2dae   :  { %v3745_v41 = vpop.eup %3744 }
0x2daf   :  { %v2217_v42 = vadd.f32 1.0, %v3745_v41  ;;  %v3747_v43 = vpop.eup %3746 }
0x2db1   :  { %3748 = vrcp.f32 %v2217_v42 }
0x2dbe   :  { %v3749_v44 = vpop.eup %3748 }
0x2dbf   :  { %v2220_v46 = vsel %vm4095_vm5, %v3747_v43, %v3749_v44 }
0x2dc0   :  { %2223 = vrot.lane.b32.xlu0 %v2220_v46, %s3945_s0  ;;  %v2221_v26 = vmul.f32 0.0, %v2220_v46 }
0x2e32   :  { %v2224_v47 = vpop.permute.xlu0 %2223 }
0x2e33   :  { %v2226_v48 = vmul.f32 %v2224_v47, %v2220_v46 }
0x2e35   :  { %2228 = vrot.lane.b32.xlu1 %v2226_v48, %s3946_s2 }
0x2ea7   :  { %v2229_v49 = vpop.permute.xlu1 %2228 }
0x2ea8   :  { %v2231_v50 = vadd.f32 %v2229_v49, %v2221_v26 }
0x2eaa   :  { %3750 = vtanh.f32 %v2231_v50  ;;  %v2327_v6 = vrot.slane %v2231_v50, 6 }
0x2eb7   :  { %v3751_v51 = vpop.eup %3750 }
0x2eb8   :  { %2234 = vrot.lane.b32.xlu0 %v3751_v51, %s3945_s0 }
0x2f2a   :  { %v2235_v52 = vpop.permute.xlu0 %2234 }
0x2f2b   :  { %v2237_v53 = vmul.f32 %v2235_v52, %v2220_v46 }
0x2f2d   :  { %2239 = vrot.lane.b32.xlu1 %v2237_v53, %s3946_s2 }
0x2f9f   :  { %v2240_v54 = vpop.permute.xlu1 %2239 }
0x2fa0   :  { %3525 = vmatmul.mubr.msk.f32.vlgmr.msra.gmra.mxu0 %vm206_vm6, %v2240_v54 }
0x2fa1   :  { %3539 = vmatpush3.msra.mxu0 %v4453_v23  ;;  %3546 = vmatprep.mubr.msk.f32.mxu0 %vm3944_vm0, %v3943_v0 }
0x2fa2   :  { %3540 = vmatprep.subr.mxu0 %v3943_v0 }
0x2fa3   :  { %3541 = vmatpush3.msra.mxu0 %v4456_v15 }
0x2fa4   :  { %3542 = vmatprep.subr.mxu0 %v3943_v0 }
0x2fa5   :  { %3543 = vmatpush3.msra.mxu0 %v4459_v28 }
0x2fa6   :  { %3544 = vmatprep.subr.mxu0 %v3943_v0 }
0x2fa7   :  { %3545 = vmatpush3.msra.mxu0 %v4463_v29 }
0x2fa8   :  { %3560 = vmatprep.subr.mxu0 %v3943_v0 }
0x3060   :  { %v2309_v55 = vpop.f32.mrf.mxu0 }
0x3061   :  { %v2314_v57 = vrot.slane %v2309_v55, 6 }
0x3062   :  { %v3526_v58 = vpop.f32.mrf.mxu0 }
0x3063   :  { %v2316_v59 = vadd.f32 %v2314_v57, %v4498_v37 }
0x3065   :  { %v2317_v60 = vadd.f32 %v4503_v10, %v2316_v59 }
0x3067   :  { %v3144_v61 = vmul.f32 -1.442695, %v2317_v60 }
0x3069   :  { %3752 = vpow2.f32 %v3144_v61 }
0x306a   :  { %3754 = vtanh.f32 %v2317_v60 }
0x3076   :  { %v3753_v62 = vpop.eup %3752 }
0x3077   :  { %v2322_v63 = vadd.f32 1.0, %v3753_v62  ;;  %v3755_v1 = vpop.eup %3754 }
0x3079   :  { %3756 = vrcp.f32 %v2322_v63 }
0x3086   :  { %v3757_v3 = vpop.eup %3756 }
0x3087   :  { %v2325_v5 = vsel %vm4095_vm5, %v3755_v1, %v3757_v3 }
0x3088   :  { %2331 = vrot.lane.b32.xlu0 %v2325_v5, %s3945_s0  ;;  %v2329_v12 = vmul.f32 %v2327_v6, %v2325_v5 }
0x30fa   :  { %v2332_v9 = vpop.permute.xlu0 %2331 }
0x30fb   :  { %v2334_v11 = vmul.f32 %v2332_v9, %v2325_v5 }
0x30fd   :  { %2336 = vrot.lane.b32.xlu1 %v2334_v11, %s3946_s2 }
0x316f   :  { %v2337_v2 = vpop.permute.xlu1 %2336 }
0x3170   :  { %v2339_v13 = vadd.f32 %v2337_v2, %v2329_v12 }
0x3172   :  { %3758 = vtanh.f32 %v2339_v13  ;;  %v2436_v33 = vrot.slane %v2339_v13, 6 }
0x317f   :  { %v3759_v45 = vpop.eup %3758 }
0x3180   :  { %2342 = vrot.lane.b32.xlu0 %v3759_v45, %s3945_s0 }
0x31f2   :  { %v2343_v4 = vpop.permute.xlu0 %2342 }
0x31f3   :  { %v2345_v7 = vmul.f32 %v2343_v4, %v2325_v5 }
0x31f5   :  { %v2347_v8 = vrot.slane %v2345_v7, 2 }
0x31f7   :  { %2348 = vrot.lane.b32.xlu1 %v2347_v8, %s3946_s2 }
0x3269   :  { %v2349_v18 = vpop.permute.xlu1 %2348 }
0x326a   :  { %3536 = vmatmul.mubr.msk.f32.vlgmr.msra.gmra.mxu1 %vm206_vm6, %v2349_v18 }
0x326b   :  { %3550 = vmatpush3.msra.mxu1 %v4453_v23  ;;  %3557 = vmatprep.mubr.msk.f32.mxu1 %vm3944_vm0, %v3943_v0 }
0x326c   :  { %3551 = vmatprep.subr.mxu1 %v3943_v0 }
0x326d   :  { %3552 = vmatpush3.msra.mxu1 %v4456_v15 }
0x326e   :  { %3553 = vmatprep.subr.mxu1 %v3943_v0 }
0x326f   :  { %3554 = vmatpush3.msra.mxu1 %v4459_v28 }
0x3270   :  { %3555 = vmatprep.subr.mxu1 %v3943_v0 }
0x3271   :  { %3556 = vmatpush3.msra.mxu1 %v4463_v29 }
0x3272   :  { %3571 = vmatprep.subr.mxu1 %v3943_v0 }
0x332a   :  { %v2418_v25 = vpop.f32.mrf.mxu1 }
0x332b   :  { %v2423_v27 = vrot.slane %v2418_v25, 4 }
0x332c   :  { %v3537_v19 = vpop.f32.mrf.mxu1 }
0x332d   :  { %v2425_v20 = vadd.f32 %v2423_v27, %v4498_v37 }
0x332f   :  { %v2426_v14 = vadd.f32 %v4503_v10, %v2425_v20 }
0x3331   :  { %v3146_v22 = vmul.f32 -1.442695, %v2426_v14 }
0x3333   :  { %3760 = vpow2.f32 %v3146_v22 }
0x3334   :  { %3762 = vtanh.f32 %v2426_v14 }
0x3340   :  { %v3761_v24 = vpop.eup %3760 }
0x3341   :  { %v2431_v56 = vadd.f32 1.0, %v3761_v24  ;;  %v3763_v16 = vpop.eup %3762 }
0x3343   :  { %3764 = vrcp.f32 %v2431_v56 }
0x3350   :  { %v3765_v17 = vpop.eup %3764 }
0x3351   :  { %v2434_v30 = vsel %vm4095_vm5, %v3763_v16, %v3765_v17 }
0x3352   :  { %2440 = vrot.lane.b32.xlu0 %v2434_v30, %s3945_s0  ;;  %v2438_v34 = vmul.f32 %v2436_v33, %v2434_v30 }
0x33c4   :  { %v2441_v31 = vpop.permute.xlu0 %2440 }
0x33c5   :  { %v2443_v32 = vmul.f32 %v2441_v31, %v2434_v30 }
0x33c7   :  { %2445 = vrot.lane.b32.xlu1 %v2443_v32, %s3946_s2 }
0x3439   :  { %v2446_v35 = vpop.permute.xlu1 %2445 }
0x343a   :  { %v2448_v38 = vadd.f32 %v2446_v35, %v2438_v34 }
0x343c   :  { %3766 = vtanh.f32 %v2448_v38 }
0x3449   :  { %v3767_v39 = vpop.eup %3766 }
0x344a   :  { %2451 = vrot.lane.b32.xlu0 %v3767_v39, %s3945_s0 }
0x34bc   :  { %v2452_v40 = vpop.permute.xlu0 %2451 }
0x34bd   :  { %v2454_v41 = vmul.f32 %v2452_v40, %v2434_v30 }
0x34bf   :  { %v2456_v42 = vrot.slane %v2454_v41, 4 }
0x34c1   :  { %2457 = vrot.lane.b32.xlu1 %v2456_v42, %s3946_s2 }
0x3533   :  { %v2458_v43 = vpop.permute.xlu1 %2457 }
0x3534   :  { %3547 = vmatmul.mubr.msk.f32.vlgmr.msra.gmra.mxu0 %vm206_vm6, %v2458_v43 }
0x3535   :  { %3561 = vmatpush3.msra.mxu0 %v4453_v23  ;;  %3568 = vmatprep.mubr.msk.f32.mxu0 %vm3944_vm0, %v3943_v0 }
0x3536   :  { %3562 = vmatprep.subr.mxu0 %v3943_v0 }
0x3537   :  { %3563 = vmatpush3.msra.mxu0 %v4456_v15 }
0x3538   :  { %3564 = vmatprep.subr.mxu0 %v3943_v0 }
0x3539   :  { %3565 = vmatpush3.msra.mxu0 %v4459_v28 }
0x353a   :  { %3566 = vmatprep.subr.mxu0 %v3943_v0 }
0x353b   :  { %3567 = vmatpush3.msra.mxu0 %v4463_v29 }
0x353c   :  { %3582 = vmatprep.subr.mxu0 %v3943_v0 }
0x35f4   :  { %v2527_v44 = vpop.f32.mrf.mxu0 }
0x35f5   :  { %v2532_v46 = vrot.slane %v2527_v44, 2 }
0x35f6   :  { %v3548_v47 = vpop.f32.mrf.mxu0 }
0x35f7   :  { %v2534_v48 = vadd.f32 %v2532_v46, %v4498_v37  ;;  %v2545_v37 = vrot.slane %v2448_v38, 6 }
0x35f9   :  { %v2535_v26 = vadd.f32 %v4503_v10, %v2534_v48 }
0x35fb   :  { %v3148_v49 = vmul.f32 -1.442695, %v2535_v26 }
0x35fd   :  { %3768 = vpow2.f32 %v3148_v49 }
0x35fe   :  { %3770 = vtanh.f32 %v2535_v26 }
0x360a   :  { %v3769_v50 = vpop.eup %3768 }
0x360b   :  { %v2540_v51 = vadd.f32 1.0, %v3769_v50  ;;  %v3771_v52 = vpop.eup %3770 }
0x360d   :  { %3772 = vrcp.f32 %v2540_v51 }
0x361a   :  { %v3773_v53 = vpop.eup %3772 }
0x361b   :  { %v2543_v54 = vsel %vm4095_vm5, %v3771_v52, %v3773_v53 }
0x361c   :  { %2549 = vrot.lane.b32.xlu0 %v2543_v54, %s3945_s0  ;;  %v2547_v58 = vmul.f32 %v2545_v37, %v2543_v54 }
0x368e   :  { %v2550_v55 = vpop.permute.xlu0 %2549 }
0x368f   :  { %v2552_v57 = vmul.f32 %v2550_v55, %v2543_v54 }
0x3691   :  { %2554 = vrot.lane.b32.xlu1 %v2552_v57, %s3946_s2 }
0x3703   :  { %v2555_v59 = vpop.permute.xlu1 %2554 }
0x3704   :  { %v2557_v60 = vadd.f32 %v2555_v59, %v2547_v58 }
0x3706   :  { %3774 = vtanh.f32 %v2557_v60  ;;  %v2651_v25 = vrot.slane %v2557_v60, 6 }
0x3713   :  { %v3775_v61 = vpop.eup %3774 }
0x3714   :  { %2560 = vrot.lane.b32.xlu0 %v3775_v61, %s3945_s0 }
0x3786   :  { %v2561_v62 = vpop.permute.xlu0 %2560 }
0x3787   :  { %v2563_v63 = vmul.f32 %v2561_v62, %v2543_v54 }
0x3789   :  { %v2565_v1 = vrot.slane %v2563_v63, 6 }
0x378b   :  { %2566 = vrot.lane.b32.xlu1 %v2565_v1, %s3946_s2 }
0x37fd   :  { %v2567_v3 = vpop.permute.xlu1 %2566 }
0x37fe   :  { %3558 = vmatmul.mubr.msk.f32.vlgmr.msra.gmra.mxu1 %vm206_vm6, %v2567_v3 }
0x37ff   :  { %3572 = vmatpush3.msra.mxu1 %v4453_v23  ;;  %3579 = vmatprep.mubr.msk.f32.mxu1 %vm3944_vm0, %v3943_v0 }
0x3800   :  { %3573 = vmatprep.subr.mxu1 %v3943_v0 }
0x3801   :  { %3574 = vmatpush3.msra.mxu1 %v4456_v15 }
0x3802   :  { %3575 = vmatprep.subr.mxu1 %v3943_v0 }
0x3803   :  { %3576 = vmatpush3.msra.mxu1 %v4459_v28 }
0x3804   :  { %3577 = vmatprep.subr.mxu1 %v3943_v0 }
0x3805   :  { %3578 = vmatpush3.msra.mxu1 %v4463_v29 }
0x3806   :  { %3593 = vmatprep.subr.mxu1 %v3943_v0 }
0x38be   :  { %v2636_v5 = vpop.f32.mrf.mxu1 }
0x38bf   :  { %v2640_v9 = vadd.f32 %v4496_v36, %v2636_v5 }
0x38c0   :  { %v3559_v11 = vpop.f32.mrf.mxu1 }
0x38c1   :  { %v2641_v6 = vadd.f32 %v4503_v10, %v2640_v9 }
0x38c3   :  { %v3150_v12 = vmul.f32 -1.442695, %v2641_v6 }
0x38c5   :  { %3776 = vpow2.f32 %v3150_v12 }
0x38c6   :  { %3778 = vtanh.f32 %v2641_v6 }
0x38d2   :  { %v3777_v2 = vpop.eup %3776 }
0x38d3   :  { %v2646_v13 = vadd.f32 1.0, %v3777_v2  ;;  %v3779_v45 = vpop.eup %3778 }
0x38d5   :  { %3780 = vrcp.f32 %v2646_v13 }
0x38e2   :  { %v3781_v4 = vpop.eup %3780 }
0x38e3   :  { %v2649_v7 = vsel %vm4095_vm5, %v3779_v45, %v3781_v4 }
0x38e4   :  { %2655 = vrot.lane.b32.xlu0 %v2649_v7, %s3945_s0  ;;  %v2653_v27 = vmul.f32 %v2651_v25, %v2649_v7 }
0x3956   :  { %v2656_v8 = vpop.permute.xlu0 %2655 }
0x3957   :  { %v2658_v18 = vmul.f32 %v2656_v8, %v2649_v7 }
0x3959   :  { %2660 = vrot.lane.b32.xlu1 %v2658_v18, %s3946_s2 }
0x39cb   :  { %v2661_v19 = vpop.permute.xlu1 %2660 }
0x39cc   :  { %v2663_v20 = vadd.f32 %v2661_v19, %v2653_v27 }
0x39ce   :  { %3782 = vtanh.f32 %v2663_v20  ;;  %v2759_v39 = vrot.slane %v2663_v20, 6 }
0x39db   :  { %v3783_v14 = vpop.eup %3782 }
0x39dc   :  { %2666 = vrot.lane.b32.xlu0 %v3783_v14, %s3945_s0 }
0x3a4e   :  { %v2667_v22 = vpop.permute.xlu0 %2666 }
0x3a4f   :  { %v2669_v24 = vmul.f32 %v2667_v22, %v2649_v7 }
0x3a51   :  { %2671 = vrot.lane.b32.xlu1 %v2669_v24, %s3946_s2 }
0x3ac3   :  { %v2672_v56 = vpop.permute.xlu1 %2671 }
0x3ac4   :  { %3569 = vmatmul.mubr.msk.f32.vlgmr.msra.gmra.mxu0 %vm206_vm6, %v2672_v56  ;;  %v2999_v56 = vld [vmem:[%s4656_s10 + $0x18] sm:$0xff] }
0x3ac5   :  { %3583 = vmatpush3.msra.mxu0 %v4453_v23  ;;  %3590 = vmatprep.mubr.msk.f32.mxu0 %vm3944_vm0, %v3943_v0 }
0x3ac6   :  { %3584 = vmatprep.subr.mxu0 %v3943_v0 }
0x3ac7   :  { %3585 = vmatpush3.msra.mxu0 %v4456_v15 }
0x3ac8   :  { %3586 = vmatprep.subr.mxu0 %v3943_v0 }
0x3ac9   :  { %3587 = vmatpush3.msra.mxu0 %v4459_v28 }
0x3aca   :  { %3588 = vmatprep.subr.mxu0 %v3943_v0 }
0x3acb   :  { %3589 = vmatpush3.msra.mxu0 %v4463_v29 }
0x3b84   :  { %v2741_v16 = vpop.f32.mrf.mxu0 }
0x3b85   :  { %v2746_v17 = vrot.slane %v2741_v16, 6  ;;  %v2997_v16 = vld [vmem:[%s4656_s10 + $0x8] sm:$0xff] }
0x3b86   :  { %v3570_v30 = vpop.f32.mrf.mxu0 }
0x3b87   :  { %v2748_v23 = vadd.f32 %v4496_v36, %v2746_v17  ;;  %v2996_v17 = vld [vmem:[%s4656_s10] sm:$0xff]  ;;  %s3908_s10 = scalar_lea.vmem %s3092_s22, 32 }
0x3b88   :  { %p3909_p11 = scmp.ne.s32.totalorder %s3092_s22, %s3908_s10  ;;  %p3914_p13 = scmp.lt.s32.totalorder %s3908_s10, %s3908_s10 }
0x3b89   :  { %v2749_v31 = vadd.f32 %v4503_v10, %v2748_v23 }
0x3b8a   :  { %p3915_p0 = por %p3914_p13, %p3913_p12 }
0x3b8b   :  { %v3152_v32 = vmul.f32 -1.442695, %v2749_v31 }
0x3b8c   :  { %p3916_p1 = pnand %p3915_p0, %p3909_p11 }
0x3b8d   :  { %3784 = vpow2.f32 %v3152_v32 }
0x3b8e   :  { %3786 = vtanh.f32 %v2749_v31 }
0x3b9a   :  { %v3785_v33 = vpop.eup %3784 }
0x3b9b   :  { %v2754_v34 = vadd.f32 1.0, %v3785_v33  ;;  %v3787_v15 = vpop.eup %3786 }
0x3b9d   :  { %3788 = vrcp.f32 %v2754_v34  ;;  %v3157_v34 = vld [vmem:[#allocation10] ss:$0 sm:$0xff] }
0x3baa   :  { %v3789_v35 = vpop.eup %3788 }
0x3bab   :  { %v2757_v28 = vsel %vm4095_vm5, %v3787_v15, %v3789_v35 }
0x3bac   :  { %2763 = vrot.lane.b32.xlu0 %v2757_v28, %s3945_s0  ;;  %v2761_v40 = vmul.f32 %v2759_v39, %v2757_v28 }
0x3c1e   :  { %v2764_v29 = vpop.permute.xlu0 %2763 }
0x3c1f   :  { %v2766_v38 = vmul.f32 %v2764_v29, %v2757_v28 }
0x3c21   :  { %2768 = vrot.lane.b32.xlu1 %v2766_v38, %s3946_s2 }
0x3c93   :  { %v2769_v41 = vpop.permute.xlu1 %2768 }
0x3c94   :  { %v2771_v42 = vadd.f32 %v2769_v41, %v2761_v40 }
0x3c96   :  { %3790 = vtanh.f32 %v2771_v42  ;;  %v2868_v61 = vrot.slane %v2771_v42, 6 }
0x3ca3   :  { %v3791_v43 = vpop.eup %3790 }
0x3ca4   :  { %2774 = vrot.lane.b32.xlu0 %v3791_v43, %s3945_s0 }
0x3d16   :  { %v2775_v44 = vpop.permute.xlu0 %2774 }
0x3d17   :  { %v2777_v46 = vmul.f32 %v2775_v44, %v2757_v28 }
0x3d19   :  { %v2779_v47 = vrot.slane %v2777_v46, 2 }
0x3d1b   :  { %2780 = vrot.lane.b32.xlu1 %v2779_v47, %s3946_s2 }
0x3d8d   :  { %v2781_v48 = vpop.permute.xlu1 %2780 }
0x3d8e   :  { %3580 = vmatmul.mubr.msk.f32.vlgmr.msra.gmra.mxu1 %vm206_vm6, %v2781_v48 }
0x3d8f   :  { %3601 = vmatprep.mubr.msk.f32.mxu1 %vm3944_vm0, %v3943_v0  ;;  %3594 = vmatpush3.msra.mxu1 %v2999_v56 }
0x3d90   :  { %3595 = vmatprep.subr.mxu1 %v3943_v0 }
0x3d91   :  { %3596 = vmatpush3.msra.mxu1 %v2998_v21 }
0x3d92   :  { %3597 = vmatprep.subr.mxu1 %v3943_v0 }
0x3d93   :  { %3598 = vmatpush3.msra.mxu1 %v2997_v16 }
0x3d94   :  { %3599 = vmatprep.subr.mxu1 %v3943_v0 }
0x3d95   :  { %3600 = vmatpush3.msra.mxu1 %v2996_v17 }
0x3e4e   :  { %v2850_v26 = vpop.f32.mrf.mxu1 }
0x3e4f   :  { %v2855_v49 = vrot.slane %v2850_v26, 4 }
0x3e50   :  { %v3581_v50 = vpop.f32.mrf.mxu1 }
0x3e51   :  { %v2857_v51 = vadd.f32 %v4496_v36, %v2855_v49 }
0x3e53   :  { %v2858_v52 = vadd.f32 %v4503_v10, %v2857_v51 }
0x3e55   :  { %v3154_v53 = vmul.f32 -1.442695, %v2858_v52 }
0x3e57   :  { %3792 = vpow2.f32 %v3154_v53 }
0x3e58   :  { %3794 = vtanh.f32 %v2858_v52 }
0x3e64   :  { %v3793_v54 = vpop.eup %3792 }
0x3e65   :  { %v2863_v55 = vadd.f32 1.0, %v3793_v54  ;;  %v3795_v57 = vpop.eup %3794 }
0x3e67   :  { %3796 = vrcp.f32 %v2863_v55 }
0x3e74   :  { %v3797_v37 = vpop.eup %3796 }
0x3e75   :  { %v2866_v58 = vsel %vm4095_vm5, %v3795_v57, %v3797_v37 }
0x3e76   :  { %2872 = vrot.lane.b32.xlu0 %v2866_v58, %s3945_s0  ;;  %v2870_v62 = vmul.f32 %v2868_v61, %v2866_v58 }
0x3ee8   :  { %v2873_v59 = vpop.permute.xlu0 %2872 }
0x3ee9   :  { %v2875_v60 = vmul.f32 %v2873_v59, %v2866_v58 }
0x3eeb   :  { %2877 = vrot.lane.b32.xlu1 %v2875_v60, %s3946_s2 }
0x3f5d   :  { %v2878_v63 = vpop.permute.xlu1 %2877 }
0x3f5e   :  { %v2880_v1 = vadd.f32 %v2878_v63, %v2870_v62 }
0x3f60   :  { %3798 = vtanh.f32 %v2880_v1 }
0x3f6d   :  { %v3799_v3 = vpop.eup %3798 }
0x3f6e   :  { %2883 = vrot.lane.b32.xlu0 %v3799_v3, %s3945_s0 }
0x3fe0   :  { %v2884_v5 = vpop.permute.xlu0 %2883 }
0x3fe1   :  { %v2886_v9 = vmul.f32 %v2884_v5, %v2866_v58 }
0x3fe3   :  { %v2888_v11 = vrot.slane %v2886_v9, 4 }
0x3fe5   :  { %2889 = vrot.lane.b32.xlu1 %v2888_v11, %s3946_s2 }
0x4057   :  { %v2890_v6 = vpop.permute.xlu1 %2889 }
0x4058   :  { %3591 = vmatmul.mubr.msk.f32.vlgmr.msra.gmra.mxu0 %vm206_vm6, %v2890_v6 }
0x4118   :  { %v2959_v12 = vpop.f32.mrf.mxu0 }
0x4119   :  { %v2964_v2 = vrot.slane %v2959_v12, 2 }
0x411a   :  { %v3592_v13 = vpop.f32.mrf.mxu0 }
0x411b   :  { %v2966_v45 = vadd.f32 %v4496_v36, %v2964_v2  ;;  %v2977_v36 = vrot.slane %v2880_v1, 6 }
0x411d   :  { %v2967_v4 = vadd.f32 %v4503_v10, %v2966_v45 }
0x411f   :  { %v3156_v7 = vmul.f32 -1.442695, %v2967_v4 }
0x4121   :  { %3800 = vpow2.f32 %v3156_v7 }
0x4122   :  { %3802 = vtanh.f32 %v2967_v4 }
0x412e   :  { %v3801_v8 = vpop.eup %3800 }
0x412f   :  { %v2972_v18 = vadd.f32 1.0, %v3801_v8  ;;  %v3803_v25 = vpop.eup %3802 }
0x4131   :  { %3804 = vrcp.f32 %v2972_v18 }
0x413e   :  { %v3805_v27 = vpop.eup %3804 }
0x413f   :  { %v2975_v19 = vsel %vm4095_vm5, %v3803_v25, %v3805_v27 }
0x4140   :  { %2981 = vrot.lane.b32.xlu0 %v2975_v19, %s3945_s0  ;;  %v2979_v22 = vmul.f32 %v2977_v36, %v2975_v19 }
0x41b2   :  { %v2982_v20 = vpop.permute.xlu0 %2981 }
0x41b3   :  { %v2984_v14 = vmul.f32 %v2982_v20, %v2975_v19 }
0x41b5   :  { %2986 = vrot.lane.b32.xlu1 %v2984_v14, %s3946_s2 }
0x4227   :  { %v2987_v10 = vpop.permute.xlu1 %2986 }
0x4228   :  { %v2989_v24 = vadd.f32 %v2987_v10, %v2979_v22 }
0x422a   :  { %3806 = vtanh.f32 %v2989_v24 }
0x4237   :  { %v3807_v30 = vpop.eup %3806 }
0x4238   :  { %2992 = vrot.lane.b32.xlu0 %v3807_v30, %s3945_s0 }
0x42aa   :  { %v2993_v23 = vpop.permute.xlu0 %2992 }
0x42ab   :  { %v2995_v31 = vmul.f32 %v2993_v23, %v2975_v19 }
0x42ad   :  { %v3008_v32 = vrot.slane %v2995_v31, 6 }
0x42af   :  { %3009 = vrot.lane.b32.xlu1 %v3008_v32, %s3946_s2 }
0x4321   :  { %v3010_v33 = vpop.permute.xlu1 %3009 }
0x4322   :  { %3602 = vmatmul.mubr.msk.f32.vlgmr.msra.gmra.mxu1 %vm206_vm6, %v3010_v33 }
0x43e2   :  { %v3079_v15 = vpop.f32.mrf.mxu1 }
0x43e3   :  { %v3080_v35 = vadd.f32 %v3157_v34, %v3079_v15 }
0x43e4   :  { %v3603_v0 = vpop.f32.mrf.mxu1 }
0x43e5   :  { %3084 = vst.msk [vmem:[#allocation11] sm:$0x3] %vm3083_vm10, %v3080_v35 }
0x43e6   :  { %3919 = shalt.err (!%p3916_p1)
}
0x43e7   :  { %3094 = dma.vmem_to_hbm [thread:$0]  %s3092_s22, 32, %s4658_s12, [#allocation4]  }
0x43e8   :  { %3934 = dma.done.wait [#allocation4], 32  }
0x43e9   :  { %3935 = vsyncadd [#allocation4], 4294967264 }
0x43ea   :  { %3098 = vsyncpa [#allocation3], 1 }
0x43eb   :  { %3099 = vsyncpa [#allocation6], 1 }
0x43ec   :  { %3100 = vsyncpa [#allocation9], 1 }
0x43ed   :  { %3101 = vsyncpa [#allocation4], 1 }

</bundles_post_ra>
